<compile_context>
chip_gen: v5e
topology: v5e:2x2
jax: 0.10.0
libtpu: 0.0.40
codegen_flags: <defaults>
</compile_context>

<pallas_src>
import functools

import jax
import jax.numpy as jnp
from jax.experimental import pallas as pl
from jax.experimental.pallas import tpu as pltpu


# ----------------------------- fused Pallas kernel ---------------------------

def _make_fused_gcn_kernel(n_layers):
    """Fused forward: n_layers of relu(A @ H @ W + b), then fc(H.mean(axis=1)).

    Kernel ref order:
      a_ref, x_ref, [w_0, b_0, ..., w_{L-1}, b_{L-1}], fcw_t_ref, fcb_ref, o_ref
    """

    def kernel(*refs):
        a_ref, x_ref = refs[0], refs[1]
        layer_refs = refs[2:2 + 2 * n_layers]
        fcw_ref, fcb_ref, o_ref = refs[-3], refs[-2], refs[-1]

        # bf16 copy of H carried between layers (one cast per layer, after relu).
        h_bf16 = x_ref[...]                               # (Np, F_in) bf16
        h = h_bf16.astype(jnp.float32)                    # only used if n_layers == 0

        # Static unroll over layers (traced once -> straight-line code).
        for l in range(n_layers):
            w = layer_refs[2 * l][...]                    # (F_in, F_out) f32
            b = layer_refs[2 * l + 1][...]                # (1, F_out)    f32
            # Re-read A from VMEM at each use; do NOT keep it live across layers.
            ax = jnp.dot(a_ref[...], h_bf16,
                         preferred_element_type=jnp.float32)         # (Np, F_in) f32
            h = jnp.dot(ax, w, preferred_element_type=jnp.float32) + b
            h = jnp.maximum(h, 0.0)                       # relu, f32 VPU path
            if l + 1 < n_layers:
                h_bf16 = h.astype(jnp.bfloat16)

        # Head: fc(H.mean(axis=1)) as a VPU/XLU multiply-reduce.
        # Padded rows are killed by the zero entries of the padded fc weight.
        m = jnp.mean(h, axis=1, keepdims=True)                        # (Np, 1)
        s = jnp.sum(fcw_ref[...] * m, axis=0, keepdims=True)          # (1, 1)
        o_ref[...] = s + fcb_ref[0]                                   # scalar bias (SMEM)

    return kernel


# ----------------------------- wrapper ---------------------------------------

def _round_up(x, m):
    return (x + m - 1) // m * m


def prepare_inputs(a_norm, feats, params):
    """One-time host-side prep: pad node dim to a multiple of 128, cast MXU
    operands to bf16, pre-transpose fc weight. Runs ONCE, outside the hot path."""
    n = a_norm.shape[0]
    f_in = feats.shape[1]
    n_pad = _round_up(n, 128)                              # 246 -> 256

    a_p = jnp.zeros((n_pad, n_pad), jnp.bfloat16).at[:n, :n].set(
        a_norm.astype(jnp.bfloat16))
    x_p = jnp.zeros((n_pad, f_in), jnp.bfloat16).at[:n, :].set(
        feats.astype(jnp.bfloat16))
    layers = tuple(
        (w.astype(jnp.float32), b.astype(jnp.float32).reshape(1, -1))
        for (w, b) in params["layers"])
    fcw_t = jnp.zeros((n_pad, 1), jnp.float32).at[:n, :].set(
        params["fc_w"].astype(jnp.float32).T)              # (Np, 1)
    fcb = params["fc_b"].astype(jnp.float32).reshape(1,)   # scalar bias -> SMEM

    return a_p, x_p, layers, fcw_t, fcb


@jax.jit
def gcn_forward(a_p, x_p, layers, fcw_t, fcb):
    """Jitted forward: a single fused pallas_call on pre-padded operands."""
    n_pad = a_p.shape[0]
    f_in = x_p.shape[1]
    n_layers = len(layers)

    operands = [a_p, x_p]
    in_specs = [
        pl.BlockSpec((n_pad, n_pad), lambda: (0, 0)),
        pl.BlockSpec((n_pad, f_in), lambda: (0, 0)),
    ]

    flops = 0
    f_last = f_in
    for (w, b) in layers:
        fi, fo = w.shape
        operands.append(w)
        operands.append(b)
        in_specs.append(pl.BlockSpec((fi, fo), lambda: (0, 0)))
        in_specs.append(pl.BlockSpec((1, fo), lambda: (0, 0)))
        flops += 2 * n_pad * n_pad * fi + 2 * n_pad * fi * fo
        f_last = fo
    flops += n_pad * f_last + 2 * n_pad   # head mean + weighted reduce

    operands += [fcw_t, fcb]
    in_specs += [
        pl.BlockSpec((n_pad, 1), lambda: (0, 0)),
        pl.BlockSpec(memory_space=pltpu.MemorySpace.SMEM),   # scalar fc bias
    ]

    bytes_accessed = sum(int(o.size) * o.dtype.itemsize for o in operands) + 4

    out = pl.pallas_call(
        _make_fused_gcn_kernel(n_layers),
        out_shape=jax.ShapeDtypeStruct((1, 1), jnp.float32),
        in_specs=in_specs,
        out_specs=pl.BlockSpec((1, 1), lambda: (0, 0)),
        cost_estimate=pl.CostEstimate(
            flops=flops, transcendentals=0, bytes_accessed=bytes_accessed),
    )(*operands)
    return out.reshape((1,))  # matches nn.Linear applied to a 1-D (246,) input


# ----------------------------- setup / main -----------------------------------

def build_normalized_adjacency(key, n_nodes, edge_prob=0.05):
    """Random symmetric graph with self loops, symmetric normalization."""
    a = (jax.random.uniform(key, (n_nodes, n_nodes)) < edge_prob).astype(jnp.float32)
    a = jnp.maximum(a, a.T)
    a = a + jnp.eye(n_nodes, dtype=jnp.float32)  # self loops -> no zero degree
    deg = jnp.sum(a, axis=1)
    d_inv_sqrt = 1.0 / jnp.sqrt(deg)
    return a * d_inv_sqrt[:, None] * d_inv_sqrt[None, :]


def init_params(key, in_feats, n_hidden, n_layers, n_nodes):
    params = {"layers": []}
    dims = [in_feats] + [n_hidden] * n_layers
    for i in range(n_layers):
        key, kw = jax.random.split(key)
        fan_in, fan_out = dims[i], dims[i + 1]
        w = jax.random.normal(kw, (fan_in, fan_out), jnp.float32) / jnp.sqrt(fan_in)
        b = jnp.zeros((1, fan_out), jnp.float32)
        params["layers"].append((w, b))
    key, kw, kb = jax.random.split(key, 3)
    params["fc_w"] = jax.random.normal(kw, (1, n_nodes), jnp.float32) / jnp.sqrt(float(n_nodes))
    params["fc_b"] = jax.random.normal(kb, (1, 1), jnp.float32) * 0.01
    return params


if __name__ == "__main__":
    # model_config: in_feats=32, n_hidden=32, n_layers=2, activation=relu,
    # dropout=0.5 (identity at eval). Graph has 246 nodes (required by fc(246, 1)).
    N_NODES, IN_FEATS, N_HIDDEN, N_LAYERS = 246, 32, 32, 2

    root = jax.random.PRNGKey(0)
    k_graph, k_feat, k_param = jax.random.split(root, 3)

    a_norm = build_normalized_adjacency(k_graph, N_NODES)
    feats = jax.random.normal(k_feat, (N_NODES, IN_FEATS), jnp.float32)
    params = init_params(k_param, IN_FEATS, N_HIDDEN, N_LAYERS, N_NODES)

    # One-time prep (pad/cast/transpose), then the jitted fused kernel call.
    a_p, x_p, layers, fcw_t, fcb = prepare_inputs(a_norm, feats, params)
    jax.block_until_ready((a_p, x_p, layers, fcw_t, fcb))

    out = gcn_forward(a_p, x_p, layers, fcw_t, fcb)
    jax.block_until_ready(out)

    assert out.shape == (1,), out.shape
    print("KERNEL_OK")
</pallas_src>

<mosaic_0001>
module attributes {stable_mosaic.version = 11 : i64} {
  func.func @kernel(%arg0: memref<256x256xbf16, #tpu.memory_space<vmem>>, %arg1: memref<256x32xbf16, #tpu.memory_space<vmem>>, %arg2: memref<32x32xf32, #tpu.memory_space<vmem>>, %arg3: memref<1x32xf32, #tpu.memory_space<vmem>>, %arg4: memref<32x32xf32, #tpu.memory_space<vmem>>, %arg5: memref<1x32xf32, #tpu.memory_space<vmem>>, %arg6: memref<256x1xf32, #tpu.memory_space<vmem>>, %arg7: memref<1xf32, #tpu.memory_space<smem>>, %arg8: memref<1x1xf32, #tpu.memory_space<vmem>>) attributes {dimension_semantics = [], scalar_prefetch = 0 : i64, scratch_operands = 0 : i64, tpu.core_type = #tpu.core_type<tc>} {
    %c0 = arith.constant 0 : index
    %c0_0 = arith.constant 0 : index
    %0 = vector.load %arg1[%c0, %c0_0] : memref<256x32xbf16, #tpu.memory_space<vmem>>, vector<256x32xbf16>
    %c0_1 = arith.constant 0 : index
    %c0_2 = arith.constant 0 : index
    %1 = vector.load %arg2[%c0_1, %c0_2] : memref<32x32xf32, #tpu.memory_space<vmem>>, vector<32x32xf32>
    %c0_3 = arith.constant 0 : index
    %c0_4 = arith.constant 0 : index
    %2 = vector.load %arg3[%c0_3, %c0_4] : memref<1x32xf32, #tpu.memory_space<vmem>>, vector<1x32xf32>
    %c0_5 = arith.constant 0 : index
    %c0_6 = arith.constant 0 : index
    %3 = vector.load %arg0[%c0_5, %c0_6] : memref<256x256xbf16, #tpu.memory_space<vmem>>, vector<256x256xbf16>
    %cst = arith.constant dense<0.000000e+00> : vector<256x32xf32>
    %4 = tpu.matmul %3, %0, %cst {dimension_numbers = #tpu.dot_dimension_numbers<[1], [0], [0], [1], [0, 0, 1, 1], [], []>} : vector<256x256xbf16>, vector<256x32xbf16>, vector<256x32xf32> -> vector<256x32xf32>
    %cst_7 = arith.constant dense<0.000000e+00> : vector<256x32xf32>
    %5 = tpu.matmul %4, %1, %cst_7 {dimension_numbers = #tpu.dot_dimension_numbers<[1], [0], [0], [1], [0, 0, 1, 1], [], []>} : vector<256x32xf32>, vector<32x32xf32>, vector<256x32xf32> -> vector<256x32xf32>
    %6 = vector.broadcast %2 : vector<1x32xf32> to vector<256x32xf32>
    %7 = arith.addf %5, %6 : vector<256x32xf32>
    %cst_8 = arith.constant 0.000000e+00 : f32
    %8 = vector.broadcast %cst_8 : f32 to vector<256x32xf32>
    %9 = arith.maximumf %7, %8 : vector<256x32xf32>
    %10 = arith.truncf %9 : vector<256x32xf32> to vector<256x32xbf16>
    %c0_9 = arith.constant 0 : index
    %c0_10 = arith.constant 0 : index
    %11 = vector.load %arg4[%c0_9, %c0_10] : memref<32x32xf32, #tpu.memory_space<vmem>>, vector<32x32xf32>
    %c0_11 = arith.constant 0 : index
    %c0_12 = arith.constant 0 : index
    %12 = vector.load %arg5[%c0_11, %c0_12] : memref<1x32xf32, #tpu.memory_space<vmem>>, vector<1x32xf32>
    %c0_13 = arith.constant 0 : index
    %c0_14 = arith.constant 0 : index
    %13 = vector.load %arg0[%c0_13, %c0_14] : memref<256x256xbf16, #tpu.memory_space<vmem>>, vector<256x256xbf16>
    %cst_15 = arith.constant dense<0.000000e+00> : vector<256x32xf32>
    %14 = tpu.matmul %13, %10, %cst_15 {dimension_numbers = #tpu.dot_dimension_numbers<[1], [0], [0], [1], [0, 0, 1, 1], [], []>} : vector<256x256xbf16>, vector<256x32xbf16>, vector<256x32xf32> -> vector<256x32xf32>
    %cst_16 = arith.constant dense<0.000000e+00> : vector<256x32xf32>
    %15 = tpu.matmul %14, %11, %cst_16 {dimension_numbers = #tpu.dot_dimension_numbers<[1], [0], [0], [1], [0, 0, 1, 1], [], []>} : vector<256x32xf32>, vector<32x32xf32>, vector<256x32xf32> -> vector<256x32xf32>
    %16 = vector.broadcast %12 : vector<1x32xf32> to vector<256x32xf32>
    %17 = arith.addf %15, %16 : vector<256x32xf32>
    %cst_17 = arith.constant 0.000000e+00 : f32
    %18 = vector.broadcast %cst_17 : f32 to vector<256x32xf32>
    %19 = arith.maximumf %17, %18 : vector<256x32xf32>
    %cst_18 = arith.constant dense<0.000000e+00> : vector<256xf32>
    %20 = vector.multi_reduction <add>, %19, %cst_18 [1] : vector<256x32xf32> to vector<256xf32>
    %21 = vector.shape_cast %20 : vector<256xf32> to vector<256x1xf32>
    %cst_19 = arith.constant 3.200000e+01 : f32
    %22 = vector.broadcast %cst_19 : f32 to vector<256x1xf32>
    %23 = arith.divf %21, %22 : vector<256x1xf32>
    %c0_20 = arith.constant 0 : index
    %c0_21 = arith.constant 0 : index
    %24 = vector.load %arg6[%c0_20, %c0_21] : memref<256x1xf32, #tpu.memory_space<vmem>>, vector<256x1xf32>
    %25 = arith.mulf %24, %23 : vector<256x1xf32>
    %cst_22 = arith.constant dense<0.000000e+00> : vector<1xf32>
    %26 = vector.multi_reduction <add>, %25, %cst_22 [0] : vector<256x1xf32> to vector<1xf32>
    %27 = vector.shape_cast %26 : vector<1xf32> to vector<1x1xf32>
    %c0_23 = arith.constant 0 : index
    %28 = memref.load %arg7[%c0_23] : memref<1xf32, #tpu.memory_space<smem>>
    %29 = vector.broadcast %28 : f32 to vector<1x1xf32>
    %30 = arith.addf %27, %29 : vector<1x1xf32>
    %c0_24 = arith.constant 0 : index
    %c0_25 = arith.constant 0 : index
    %31 = vector.load %arg8[%c0_24, %c0_25] : memref<1x1xf32, #tpu.memory_space<vmem>>, vector<1x1xf32>
    tpu.vector_store %arg8[%c0_24, %c0_25], %30 {strides = array<i32>} : memref<1x1xf32, #tpu.memory_space<vmem>>, vector<1x1xf32>,
    return
  }
}

</mosaic_0001>

<bundles_post_ra>
// kernel: gcn_forward.1
= control target key start
LH: loop header
LB: loop body
LE: loop exit
PB: predicated region body
PF: predicated region fallthrough
CT: control target
= control target key end

     0   :  { %s2710_s0 = inlined_call_operand.vmem [shape: bf16[256,256], index: 0, kind: input, shape index: {}]   ;;  %s2711_s1 = inlined_call_operand.vmem [shape: bf16[256,32], index: 1, kind: input, shape index: {}]   ;;  %s2712_s2 = inlined_call_operand.vmem [shape: f32[32,32], index: 2, kind: input, shape index: {}]   ;;  %s2713_s3 = inlined_call_operand.vmem [shape: f32[1,32], index: 3, kind: input, shape index: {}]   ;;  %s2714_s4 = inlined_call_operand.vmem [shape: f32[32,32], index: 4, kind: input, shape index: {}]   ;;  %s2715_s5 = inlined_call_operand.vmem [shape: f32[1,32], index: 5, kind: input, shape index: {}]   ;;  %s2716_s6 = inlined_call_operand.vmem [shape: f32[256,1], index: 6, kind: input, shape index: {}]   ;;  %s2717_s7 = inlined_call_operand.<no memory space> [shape: f32[1], index: 7, kind: input, shape index: {}]   ;;  %s2718_s8 = inlined_call_operand.hbm [shape: f32[1,1], index: 8, kind: output, shape index: {}]  }
   0x1   :  { %v1775_v0 = vld [vmem:[%s2711_s1 + $0x38] sm:$0xff]  ;;  %v1774_v1 = vld [vmem:[%s2711_s1 + $0x30] sm:$0xff] }
   0x2   :  { %1816 = vmatpush.bf16.msra.mxu1 %v1775_v0  ;;  %356 = vmatpush.bf16.msra.mxu0 %v1775_v0 }
   0x3   :  { %14 = vsyncpa [#allocation4], 0  ;;  %v1773_v2 = vld [vmem:[%s2711_s1 + $0x28] sm:$0xff]  ;;  %v1772_v3 = vld [vmem:[%s2711_s1 + $0x20] sm:$0xff]  ;;  %vm537_vm0 = vcmask 261120   ;;  %vm1421_vm2 = vcmask 7168  }
   0x4   :  { %v1771_v4 = vld [vmem:[%s2711_s1 + $0x18] sm:$0xff]  ;;  %v1770_v5 = vld [vmem:[%s2711_s1 + $0x10] sm:$0xff]  ;;  %v1769_v6 = vld [vmem:[%s2711_s1 + $0x8] sm:$0xff]  ;;  %s1503_s9 = sshll.u32 %s2718_s8, 4  ;;  %vm1494_vm3 = vcmask 0   ;;  %s1504_s9 = int_to_ptr.hbm [resolvable:$true] %s1503_s9 }
   0x5   :  { %v1768_v7 = vld [vmem:[%s2711_s1] sm:$0xff]  ;;  %v1801_v9 = vld [vmem:[%s2710_s0 + $0x84] sm:$0xf0]  ;;  %v1586_v11 = vld [vmem:[%s2710_s0 + $0x90] sm:$0xf] }
   0x6   :  { %1817 = vmatpush.bf16.msra.mxu1 %v1774_v1  ;;  %357 = vmatpush.bf16.msra.mxu0 %v1774_v1  ;;  %v1578_v8 = vld [vmem:[%s2710_s0 + $0x80] sm:$0xf]  ;;  %v1803_v12 = vld [vmem:[%s2710_s0 + $0x94] sm:$0xf0]  ;;  %v1805_v15 = vld [vmem:[%s2710_s0 + $0xa4] sm:$0xf0] }
   0x7   :  { %v1941_v10 = vor.u32 %v1801_v9, %v1578_v8  ;;  %v1950_v13 = vor.u32 %v1803_v12, %v1586_v11  ;;  %v1594_v14 = vld [vmem:[%s2710_s0 + $0xa0] sm:$0xf]  ;;  %v1602_v17 = vld [vmem:[%s2710_s0 + $0xb0] sm:$0xf]  ;;  %v1807_v18 = vld [vmem:[%s2710_s0 + $0xb4] sm:$0xf0] }
   0x8   :  { %v1959_v16 = vor.u32 %v1805_v15, %v1594_v14  ;;  %v1968_v19 = vor.u32 %v1807_v18, %v1602_v17  ;;  %v1610_v20 = vld [vmem:[%s2710_s0 + $0xc0] sm:$0xf]  ;;  %v1809_v21 = vld [vmem:[%s2710_s0 + $0xc4] sm:$0xf0]  ;;  %v1783_v23 = vld [vmem:[%s2711_s1 + $0x78] sm:$0xff] }
   0x9   :  { %v1977_v22 = vor.u32 %v1809_v21, %v1610_v20  ;;  %v1782_v24 = vld [vmem:[%s2711_s1 + $0x70] sm:$0xff]  ;;  %v1781_v25 = vld [vmem:[%s2711_s1 + $0x68] sm:$0xff]  ;;  %v1811_v27 = vld [vmem:[%s2710_s0 + $0xd4] sm:$0xf0] }
   0xa   :  { %1818 = vmatpush.bf16.msra.mxu1 %v1773_v2  ;;  %358 = vmatpush.bf16.msra.mxu0 %v1773_v2  ;;  %v1618_v26 = vld [vmem:[%s2710_s0 + $0xd0] sm:$0xf]  ;;  %v1780_v28 = vld [vmem:[%s2711_s1 + $0x60] sm:$0xff]  ;;  %v1779_v30 = vld [vmem:[%s2711_s1 + $0x58] sm:$0xff] }
   0xb   :  { %v1998_v29 = vor.u32 %v1811_v27, %v1618_v26  ;;  %v1778_v31 = vld [vmem:[%s2711_s1 + $0x50] sm:$0xff]  ;;  %v1777_v32 = vld [vmem:[%s2711_s1 + $0x48] sm:$0xff]  ;;  %v1626_v33 = vld [vmem:[%s2710_s0 + $0xe0] sm:$0xf] }
   0xc   :  { %v1813_v34 = vld [vmem:[%s2710_s0 + $0xe4] sm:$0xf0]  ;;  %v1776_v35 = vld [vmem:[%s2711_s1 + $0x40] sm:$0xff]  ;;  %v1634_v40 = vld [vmem:[%s2710_s0 + $0xf0] sm:$0xf] }
   0xd   :  { %v2019_v36 = vor.u32 %v1813_v34, %v1626_v33  ;;  %v1514_v37 = vld [vmem:[%s2710_s0] sm:$0xf]  ;;  %v1785_v38 = vld [vmem:[%s2710_s0 + $0x4] sm:$0xf0]  ;;  %v1815_v41 = vld [vmem:[%s2710_s0 + $0xf4] sm:$0xf0] }
   0xe   :  { %1819 = vmatpush.bf16.msra.mxu1 %v1772_v3  ;;  %359 = vmatpush.bf16.msra.mxu0 %v1772_v3  ;;  %v2027_v39 = vor.u32 %v1785_v38, %v1514_v37  ;;  %v2037_v42 = vor.u32 %v1815_v41, %v1634_v40  ;;  %v1522_v43 = vld [vmem:[%s2710_s0 + $0x10] sm:$0xf]  ;;  %v1787_v44 = vld [vmem:[%s2710_s0 + $0x14] sm:$0xf0]  ;;  %v1784_v46 = vld [vmem:[%s2710_s0 + $0x4] sm:$0xf] }
   0xf   :  { %v2045_v45 = vor.u32 %v1787_v44, %v1522_v43  ;;  %v1516_v47 = vld [vmem:[%s2710_s0 + $0x8] sm:$0xf0]  ;;  %v1530_v50 = vld [vmem:[%s2710_s0 + $0x20] sm:$0xf]  ;;  %v1789_v51 = vld [vmem:[%s2710_s0 + $0x24] sm:$0xf0] }
  0x10   :  { %v2055_v48 = vor.u32 %v1784_v46, %v1516_v47  ;;  %v2065_v52 = vor.u32 %v1789_v51, %v1530_v50  ;;  %v1786_v54 = vld [vmem:[%s2710_s0 + $0x14] sm:$0xf]  ;;  %v1524_v55 = vld [vmem:[%s2710_s0 + $0x18] sm:$0xf0]  ;;  %v1538_v58 = vld [vmem:[%s2710_s0 + $0x30] sm:$0xf] }
  0x11   :  { %v2077_v56 = vor.u32 %v1786_v54, %v1524_v55  ;;  %v1791_v59 = vld [vmem:[%s2710_s0 + $0x34] sm:$0xf0]  ;;  %v1788_v62 = vld [vmem:[%s2710_s0 + $0x24] sm:$0xf]  ;;  %v1532_v63 = vld [vmem:[%s2710_s0 + $0x28] sm:$0xf0] }
  0x12   :  { %1820 = vmatpush.bf16.msra.mxu1 %v1771_v4  ;;  %360 = vmatpush.bf16.msra.mxu0 %v1771_v4  ;;  %v2087_v60 = vor.u32 %v1791_v59, %v1538_v58  ;;  %v2099_v0 = vor.u32 %v1788_v62, %v1532_v63  ;;  %v1546_v2 = vld [vmem:[%s2710_s0 + $0x40] sm:$0xf]  ;;  %v1793_v3 = vld [vmem:[%s2710_s0 + $0x44] sm:$0xf0]  ;;  %v1554_v11 = vld [vmem:[%s2710_s0 + $0x50] sm:$0xf] }
  0x13   :  { %v2109_v4 = vor.u32 %v1793_v3, %v1546_v2  ;;  %v1795_v12 = vld [vmem:[%s2710_s0 + $0x54] sm:$0xf0]  ;;  %v1792_v17 = vld [vmem:[%s2710_s0 + $0x44] sm:$0xf]  ;;  %v1548_v18 = vld [vmem:[%s2710_s0 + $0x48] sm:$0xf0] }
  0x14   :  { %v2131_v14 = vor.u32 %v1795_v12, %v1554_v11  ;;  %v2143_v20 = vor.u32 %v1792_v17, %v1548_v18  ;;  %v1794_v27 = vld [vmem:[%s2710_s0 + $0x54] sm:$0xf]  ;;  %v1799_v33 = vld [vmem:[%s2710_s0 + $0x74] sm:$0xf0]  ;;  %v1796_v40 = vld [vmem:[%s2710_s0 + $0x64] sm:$0xf] }
  0x15   :  { %v66_v37 = vld [vmem:[%s2712_s2 + $0x18] sm:$0xff]  ;;  %v65_v38 = vld [vmem:[%s2712_s2 + $0x10] sm:$0xff]  ;;  %v1564_v41 = vld [vmem:[%s2710_s0 + $0x68] sm:$0xf0] }
  0x16   :  { %1821 = vmatpush.bf16.msra.mxu1 %v1770_v5  ;;  %361 = vmatpush.bf16.msra.mxu0 %v1770_v5  ;;  %v2193_v43 = vor.u32 %v1796_v40, %v1564_v41  ;;  %v64_v44 = vld [vmem:[%s2712_s2 + $0x8] sm:$0xff]  ;;  %v63_v50 = vld [vmem:[%s2712_s2] sm:$0xff]  ;;  %v1798_v55 = vld [vmem:[%s2710_s0 + $0x74] sm:$0xf] }
  0x17   :  { %646 = vmatpush.msra.mxu2 %v66_v37  ;;  %1824 = vmatpush.msra.mxu3 %v66_v37  ;;  %v1572_v58 = vld [vmem:[%s2710_s0 + $0x78] sm:$0xf0]  ;;  %v1800_v3 = vld [vmem:[%s2710_s0 + $0x84] sm:$0xf] }
  0x18   :  { %v2212_v59 = vor.u32 %v1798_v55, %v1572_v58 }
  0x19   :  { %647 = vmatpush.msra.mxu2 %v65_v38  ;;  %1825 = vmatpush.msra.mxu3 %v65_v38 }
  0x1a   :  { %1822 = vmatpush.bf16.msra.mxu1 %v1769_v6  ;;  %362 = vmatpush.bf16.msra.mxu0 %v1769_v6  ;;  %v1790_v6 = vld [vmem:[%s2710_s0 + $0x34] sm:$0xf] }
  0x1b   :  { %648 = vmatpush.msra.mxu2 %v64_v44  ;;  %1826 = vmatpush.msra.mxu3 %v64_v44  ;;  %v1804_v44 = vld [vmem:[%s2710_s0 + $0xa4] sm:$0xf] }
  0x1d   :  { %649 = vmatpush.msra.mxu2 %v63_v50  ;;  %1827 = vmatpush.msra.mxu3 %v63_v50 }
  0x1e   :  { %1823 = vmatpush.bf16.msra.mxu1 %v1768_v7  ;;  %363 = vmatpush.bf16.msra.mxu0 %v1768_v7  ;;  %v1540_v7 = vld [vmem:[%s2710_s0 + $0x38] sm:$0xf0] }
  0x1f   :  { %v2121_v8 = vor.u32 %v1790_v6, %v1540_v7  ;;  %v1580_v6 = vld [vmem:[%s2710_s0 + $0x88] sm:$0xf0] }
  0x20   :  { %v2225_v11 = vor.u32 %v1800_v3, %v1580_v6 }
  0x21   :  { %404 = vmatmul.bf16.vlgmr.msra.gmra.mxu1 %v1941_v10  ;;  %364 = vmatmul.bf16.vlgmr.msra.gmra.mxu0 %v2027_v39 }
  0x22   :  { %445 = vmatpush.bf16.msrb.mxu1 %v1783_v23  ;;  %v1562_v23 = vld [vmem:[%s2710_s0 + $0x60] sm:$0xf] }
  0x26   :  { %446 = vmatpush.bf16.msrb.mxu1 %v1782_v24  ;;  %v1797_v24 = vld [vmem:[%s2710_s0 + $0x64] sm:$0xf0] }
  0x2a   :  { %447 = vmatpush.bf16.msrb.mxu1 %v1781_v25  ;;  %v2153_v25 = vor.u32 %v1797_v24, %v1562_v23 }
  0x2e   :  { %448 = vmatpush.bf16.msrb.mxu1 %v1780_v28  ;;  %v1556_v28 = vld [vmem:[%s2710_s0 + $0x58] sm:$0xf0] }
  0x31   :  { %409 = vmatmul.bf16.gmra.mxu1 %v1950_v13  ;;  %369 = vmatmul.bf16.gmra.mxu0 %v2045_v45 }
  0x32   :  { %449 = vmatpush.bf16.msrb.mxu1 %v1779_v30  ;;  %v2165_v30 = vor.u32 %v1794_v27, %v1556_v28  ;;  %v1802_v27 = vld [vmem:[%s2710_s0 + $0x94] sm:$0xf]  ;;  %v1588_v28 = vld [vmem:[%s2710_s0 + $0x98] sm:$0xf0] }
  0x36   :  { %450 = vmatpush.bf16.msrb.mxu1 %v1778_v31 }
  0x3a   :  { %451 = vmatpush.bf16.msrb.mxu1 %v1777_v32  ;;  %v1570_v32 = vld [vmem:[%s2710_s0 + $0x70] sm:$0xf] }
  0x3b   :  { %v2175_v34 = vor.u32 %v1799_v33, %v1570_v32  ;;  %v2236_v32 = vor.u32 %v1802_v27, %v1588_v28 }
  0x3e   :  { %452 = vmatpush.bf16.msrb.mxu1 %v1776_v35 }
  0x41   :  { %414 = vmatmul.bf16.gmra.mxu1 %v1959_v16  ;;  %374 = vmatmul.bf16.gmra.mxu0 %v2065_v52 }
  0x51   :  { %419 = vmatmul.bf16.gmra.mxu1 %v1968_v19  ;;  %379 = vmatmul.bf16.gmra.mxu0 %v2087_v60 }
  0x61   :  { %424 = vmatmul.bf16.gmra.mxu1 %v1977_v22  ;;  %384 = vmatmul.bf16.gmra.mxu0 %v2109_v4 }
  0x71   :  { %429 = vmatmul.bf16.gmra.mxu1 %v1998_v29  ;;  %389 = vmatmul.bf16.gmra.mxu0 %v2131_v14 }
  0x81   :  { %434 = vmatmul.bf16.gmra.mxu1 %v2019_v36  ;;  %394 = vmatmul.bf16.gmra.mxu0 %v2153_v25 }
  0x91   :  { %439 = vmatmul.bf16.gmra.mxu1 %v2037_v42  ;;  %399 = vmatmul.bf16.gmra.mxu0 %v2175_v34 }
  0x9e   :  { %v2057_v49 = vpop.f32.mrf.mxu1  ;;  %v365_v47 = vpop.f32.mrf.mxu0 }
  0xa1   :  { %453 = vmatmul.bf16.vlgmr.msrb.gmra.mxu1 %v2055_v48 }
  0xa6   :  { %v2069_v53 = vpop.f32.mrf.mxu1  ;;  %v367_v54 = vpop.f32.mrf.mxu0 }
  0xae   :  { %v2079_v57 = vpop.f32.mrf.mxu1  ;;  %v370_v63 = vpop.f32.mrf.mxu0 }
  0xb1   :  { %458 = vmatmul.bf16.gmra.mxu1 %v2077_v56 }
  0xb6   :  { %v2091_v61 = vpop.f32.mrf.mxu1  ;;  %v372_v7 = vpop.f32.mrf.mxu0 }
  0xbe   :  { %v2101_v1 = vpop.f32.mrf.mxu1  ;;  %v375_v23 = vpop.f32.mrf.mxu0 }
  0xc1   :  { %463 = vmatmul.bf16.gmra.mxu1 %v2099_v0 }
  0xc6   :  { %v2113_v5 = vpop.f32.mrf.mxu1  ;;  %v377_v38 = vpop.f32.mrf.mxu0 }
  0xce   :  { %v2123_v9 = vpop.f32.mrf.mxu1  ;;  %v380_v50 = vpop.f32.mrf.mxu0 }
  0xd1   :  { %468 = vmatmul.bf16.gmra.mxu1 %v2121_v8 }
  0xd6   :  { %v2135_v15 = vpop.f32.mrf.mxu1 }
  0xde   :  { %v2145_v21 = vpop.f32.mrf.mxu1 }
  0xe1   :  { %473 = vmatmul.bf16.gmra.mxu1 %v2143_v20 }
  0xe6   :  { %v2157_v26 = vpop.f32.mrf.mxu1 }
  0xee   :  { %v2167_v31 = vpop.f32.mrf.mxu1 }
  0xf1   :  { %478 = vmatmul.bf16.gmra.mxu1 %v2165_v30 }
  0xf6   :  { %v2179_v35 = vpop.f32.mrf.mxu1 }
  0xfe   :  { %v2198_v46 = vpop.f32.mrf.mxu1 }
 0x101   :  { %483 = vmatmul.bf16.gmra.mxu1 %v2193_v43 }
 0x106   :  { %v2204_v51 = vpop.f32.mrf.mxu1 }
 0x10e   :  { %v2214_v62 = vpop.f32.mrf.mxu1 }
 0x111   :  { %488 = vmatmul.bf16.gmra.mxu1 %v2212_v59 }
 0x116   :  { %v2217_v2 = vpop.f32.mrf.mxu1 }
 0x11e   :  { %v454_v12 = vpop.f32.mrf.mxu1 }
 0x11f   :  { %v455_v17 = vadd.f32 %v454_v12, %v365_v47  ;;  %v1596_v47 = vld [vmem:[%s2710_s0 + $0xa8] sm:$0xf0]  ;;  %v1604_v12 = vld [vmem:[%s2710_s0 + $0xb8] sm:$0xf0] }
 0x121   :  { %493 = vmatmul.bf16.gmra.mxu1 %v2225_v11  ;;  %1704 = vmatmul.msk.f32.vlgmr.msra.gmra.mxu2 %vm537_vm0, %v455_v17 }
 0x126   :  { %v456_v18 = vpop.f32.mrf.mxu1 }
 0x127   :  { %v457_v24 = vadd.f32 %v456_v18, %v367_v54  ;;  %v2247_v54 = vor.u32 %v1804_v44, %v1596_v47 }
 0x129   :  { %1705 = vmatmul.msk.f32.gmra.mxu2 %vm537_vm0, %v457_v24 }
 0x12e   :  { %v459_v33 = vpop.f32.mrf.mxu1 }
 0x12f   :  { %v460_v37 = vadd.f32 %v459_v33, %v370_v63  ;;  %v382_v63 = vpop.f32.mrf.mxu0 }
 0x131   :  { %498 = vmatmul.bf16.gmra.mxu1 %v2236_v32  ;;  %1706 = vmatmul.msk.f32.gmra.mxu2 %vm537_vm0, %v460_v37  ;;  %v1808_v37 = vld [vmem:[%s2710_s0 + $0xc4] sm:$0xf] }
 0x136   :  { %v461_v40 = vpop.f32.mrf.mxu1 }
 0x137   :  { %v462_v41 = vadd.f32 %v461_v40, %v372_v7  ;;  %v1806_v7 = vld [vmem:[%s2710_s0 + $0xb4] sm:$0xf] }
 0x138   :  { %v2258_v17 = vor.u32 %v1806_v7, %v1604_v12 }
 0x139   :  { %1707 = vmatmul.msk.f32.gmra.mxu2 %vm537_vm0, %v462_v41 }
 0x13e   :  { %v464_v55 = vpop.f32.mrf.mxu1 }
 0x13f   :  { %v465_v58 = vadd.f32 %v464_v55, %v375_v23  ;;  %v385_v23 = vpop.f32.mrf.mxu0 }
 0x141   :  { %503 = vmatmul.bf16.gmra.mxu1 %v2247_v54  ;;  %1708 = vmatmul.msk.f32.gmra.mxu2 %vm537_vm0, %v465_v58  ;;  %v1810_v58 = vld [vmem:[%s2710_s0 + $0xd4] sm:$0xf] }
 0x146   :  { %v466_v3 = vpop.f32.mrf.mxu1 }
 0x147   :  { %v467_v6 = vadd.f32 %v466_v3, %v377_v38  ;;  %v387_v33 = vpop.f32.mrf.mxu0  ;;  %v1612_v38 = vld [vmem:[%s2710_s0 + $0xc8] sm:$0xf0] }
 0x148   :  { %v2269_v40 = vor.u32 %v1808_v37, %v1612_v38 }
 0x149   :  { %1709 = vmatmul.msk.f32.gmra.mxu2 %vm537_vm0, %v467_v6 }
 0x14e   :  { %v469_v18 = vpop.f32.mrf.mxu1 }
 0x14f   :  { %v470_v24 = vadd.f32 %v469_v18, %v380_v50  ;;  %v390_v47 = vpop.f32.mrf.mxu0 }
 0x151   :  { %508 = vmatmul.bf16.gmra.mxu1 %v2258_v17  ;;  %1710 = vmatmul.msk.f32.gmra.mxu2 %vm537_vm0, %v470_v24 }
 0x156   :  { %v471_v27 = vpop.f32.mrf.mxu1 }
 0x157   :  { %v472_v28 = vadd.f32 %v471_v27, %v382_v63  ;;  %v1620_v63 = vld [vmem:[%s2710_s0 + $0xd8] sm:$0xf0]  ;;  %v392_v3 = vpop.f32.mrf.mxu0  ;;  %v1812_v27 = vld [vmem:[%s2710_s0 + $0xe4] sm:$0xf] }
 0x158   :  { %v2280_v6 = vor.u32 %v1810_v58, %v1620_v63  ;;  %v1636_v58 = vld [vmem:[%s2710_s0 + $0xf8] sm:$0xf0] }
 0x159   :  { %1711 = vmatmul.msk.f32.gmra.mxu2 %vm537_vm0, %v472_v28  ;;  %v1628_v28 = vld [vmem:[%s2710_s0 + $0xe8] sm:$0xf0] }
 0x15e   :  { %v474_v41 = vpop.f32.mrf.mxu1 }
 0x15f   :  { %v475_v44 = vadd.f32 %v474_v41, %v385_v23  ;;  %v395_v23 = vpop.f32.mrf.mxu0 }
 0x161   :  { %513 = vmatmul.bf16.gmra.mxu1 %v2269_v40  ;;  %1712 = vmatmul.msk.f32.gmra.mxu2 %vm537_vm0, %v475_v44 }
 0x166   :  { %v476_v50 = vpop.f32.mrf.mxu1 }
 0x167   :  { %v477_v55 = vadd.f32 %v476_v50, %v387_v33  ;;  %v2291_v33 = vor.u32 %v1812_v27, %v1628_v28  ;;  %v397_v41 = vpop.f32.mrf.mxu0 }
 0x169   :  { %1713 = vmatmul.msk.f32.gmra.mxu2 %vm537_vm0, %v477_v55  ;;  %v1814_v55 = vld [vmem:[%s2710_s0 + $0xf4] sm:$0xf] }
 0x16a   :  { %v2302_v63 = vor.u32 %v1814_v55, %v1636_v58 }
 0x16e   :  { %v479_v7 = vpop.f32.mrf.mxu1 }
 0x16f   :  { %v480_v12 = vadd.f32 %v479_v7, %v390_v47  ;;  %v400_v50 = vpop.f32.mrf.mxu0 }
 0x171   :  { %518 = vmatmul.bf16.gmra.mxu1 %v2280_v6  ;;  %1714 = vmatmul.msk.f32.gmra.mxu2 %vm537_vm0, %v480_v12 }
 0x176   :  { %v481_v18 = vpop.f32.mrf.mxu1 }
 0x177   :  { %v482_v24 = vadd.f32 %v481_v18, %v392_v3  ;;  %v402_v12 = vpop.f32.mrf.mxu0 }
 0x179   :  { %1715 = vmatmul.msk.f32.gmra.mxu2 %vm537_vm0, %v482_v24 }
 0x17e   :  { %v484_v37 = vpop.f32.mrf.mxu1 }
 0x17f   :  { %v485_v38 = vadd.f32 %v484_v37, %v395_v23 }
 0x181   :  { %523 = vmatmul.bf16.gmra.mxu1 %v2291_v33  ;;  %1716 = vmatmul.msk.f32.gmra.mxu2 %vm537_vm0, %v485_v38 }
 0x186   :  { %v486_v44 = vpop.f32.mrf.mxu1 }
 0x187   :  { %v487_v47 = vadd.f32 %v486_v44, %v397_v41 }
 0x189   :  { %1717 = vmatmul.msk.f32.gmra.mxu2 %vm537_vm0, %v487_v47 }
 0x18e   :  { %v489_v3 = vpop.f32.mrf.mxu1 }
 0x18f   :  { %v490_v7 = vadd.f32 %v489_v3, %v400_v50 }
 0x191   :  { %528 = vmatmul.bf16.gmra.mxu1 %v2302_v63  ;;  %1718 = vmatmul.msk.f32.gmra.mxu2 %vm537_vm0, %v490_v7 }
 0x196   :  { %v491_v18 = vpop.f32.mrf.mxu1 }
 0x197   :  { %v492_v23 = vadd.f32 %v491_v18, %v402_v12 }
 0x199   :  { %1719 = vmatmul.msk.f32.gmra.mxu2 %vm537_vm0, %v492_v23 }
 0x19e   :  { %v494_v24 = vpop.f32.mrf.mxu1 }
 0x19f   :  { %v495_v27 = vadd.f32 %v494_v24, %v2057_v49 }
 0x1a1   :  { %1720 = vmatmul.msk.f32.gmra.mxu2 %vm537_vm0, %v495_v27 }
 0x1a4   :  { %v2309_v28 = vpop.f32.mrf.mxu2 }
 0x1a6   :  { %v496_v37 = vpop.f32.mrf.mxu1 }
 0x1a7   :  { %v497_v38 = vadd.f32 %v496_v37, %v2069_v53 }
 0x1a9   :  { %1721 = vmatmul.msk.f32.gmra.mxu2 %vm537_vm0, %v497_v38 }
 0x1ac   :  { %v2313_v41 = vpop.f32.mrf.mxu2 }
 0x1ae   :  { %v499_v44 = vpop.f32.mrf.mxu1 }
 0x1af   :  { %v500_v47 = vadd.f32 %v499_v44, %v2079_v57 }
 0x1b1   :  { %1722 = vmatmul.msk.f32.vlgmr.msra.gmra.mxu3 %vm537_vm0, %v500_v47 }
 0x1b4   :  { %v2317_v50 = vpop.f32.mrf.mxu2 }
 0x1b6   :  { %v501_v55 = vpop.f32.mrf.mxu1 }
 0x1b7   :  { %v502_v49 = vadd.f32 %v501_v55, %v2091_v61 }
 0x1b9   :  { %1723 = vmatmul.msk.f32.gmra.mxu3 %vm537_vm0, %v502_v49 }
 0x1bc   :  { %v2321_v58 = vpop.f32.mrf.mxu2 }
 0x1be   :  { %v504_v3 = vpop.f32.mrf.mxu1 }
 0x1bf   :  { %v505_v53 = vadd.f32 %v504_v3, %v2101_v1 }
 0x1c1   :  { %1724 = vmatmul.msk.f32.gmra.mxu3 %vm537_vm0, %v505_v53 }
 0x1c4   :  { %v2325_v7 = vpop.f32.mrf.mxu2 }
 0x1c6   :  { %v506_v12 = vpop.f32.mrf.mxu1 }
 0x1c7   :  { %v507_v57 = vadd.f32 %v506_v12, %v2113_v5 }
 0x1c9   :  { %1725 = vmatmul.msk.f32.gmra.mxu3 %vm537_vm0, %v507_v57 }
 0x1cc   :  { %v2329_v18 = vpop.f32.mrf.mxu2 }
 0x1ce   :  { %v509_v23 = vpop.f32.mrf.mxu1 }
 0x1cf   :  { %v510_v61 = vadd.f32 %v509_v23, %v2123_v9 }
 0x1d1   :  { %1726 = vmatmul.msk.f32.gmra.mxu3 %vm537_vm0, %v510_v61 }
 0x1d4   :  { %v669_v24 = vpop.f32.mrf.mxu2 }
 0x1d6   :  { %v511_v27 = vpop.f32.mrf.mxu1 }
 0x1d7   :  { %v512_v1 = vadd.f32 %v511_v27, %v2135_v15 }
 0x1d9   :  { %1727 = vmatmul.msk.f32.gmra.mxu3 %vm537_vm0, %v512_v1 }
 0x1dc   :  { %v672_v37 = vpop.f32.mrf.mxu2 }
 0x1de   :  { %v514_v38 = vpop.f32.mrf.mxu1 }
 0x1df   :  { %v515_v44 = vadd.f32 %v514_v38, %v2145_v21 }
 0x1e1   :  { %1728 = vmatmul.msk.f32.gmra.mxu3 %vm537_vm0, %v515_v44 }
 0x1e4   :  { %v675_v5 = vpop.f32.mrf.mxu2 }
 0x1e6   :  { %v516_v47 = vpop.f32.mrf.mxu1 }
 0x1e7   :  { %v517_v55 = vadd.f32 %v516_v47, %v2157_v26 }
 0x1e9   :  { %1729 = vmatmul.msk.f32.gmra.mxu3 %vm537_vm0, %v517_v55 }
 0x1ec   :  { %v678_v9 = vpop.f32.mrf.mxu2 }
 0x1ee   :  { %v519_v49 = vpop.f32.mrf.mxu1 }
 0x1ef   :  { %v520_v3 = vadd.f32 %v519_v49, %v2167_v31 }
 0x1f1   :  { %1730 = vmatmul.msk.f32.gmra.mxu3 %vm537_vm0, %v520_v3 }
 0x1f4   :  { %v681_v15 = vpop.f32.mrf.mxu2 }
 0x1f6   :  { %v521_v53 = vpop.f32.mrf.mxu1 }
 0x1f7   :  { %v522_v12 = vadd.f32 %v521_v53, %v2179_v35 }
 0x1f9   :  { %1731 = vmatmul.msk.f32.gmra.mxu3 %vm537_vm0, %v522_v12 }
 0x1fc   :  { %v684_v21 = vpop.f32.mrf.mxu2 }
 0x1fe   :  { %v524_v57 = vpop.f32.mrf.mxu1 }
 0x1ff   :  { %v525_v23 = vadd.f32 %v524_v57, %v2198_v46  ;;  %v2353_v46 = vld [vmem:[%s2713_s3] ss:$0 sm:$0xff] }
 0x201   :  { %1732 = vmatmul.msk.f32.gmra.mxu3 %vm537_vm0, %v525_v23 }
 0x204   :  { %v687_v26 = vpop.f32.mrf.mxu2 }
 0x205   :  { %v688_v3 = vadd.f32 %v2353_v46, %v687_v26  ;;  %v673_v26 = vadd.f32 %v2353_v46, %v672_v37 }
 0x206   :  { %v526_v61 = vpop.f32.mrf.mxu1 }
 0x207   :  { %v527_v27 = vadd.f32 %v526_v61, %v2204_v51  ;;  %v682_v61 = vadd.f32 %v2353_v46, %v681_v15  ;;  %v667_v15 = vadd.f32 %v2353_v46, %v2329_v18  ;;  %v655_v18 = vadd.f32 %v2353_v46, %v2313_v41 }
 0x209   :  { %1733 = vmatmul.msk.f32.gmra.mxu3 %vm537_vm0, %v527_v27  ;;  %v759_v27 = vmax.f32 %v688_v3, 0.0  ;;  %v752_v37 = vmax.f32 %v667_v15, 0.0 }
 0x20c   :  { %v690_v31 = vpop.f32.mrf.mxu2 }
 0x20d   :  { %v691_v49 = vadd.f32 %v2353_v46, %v690_v31  ;;  %v676_v31 = vadd.f32 %v2353_v46, %v675_v5  ;;  %v661_v5 = vadd.f32 %v2353_v46, %v2321_v58  ;;  %v748_v58 = vmax.f32 %v655_v18, 0.0 }
 0x20e   :  { %v529_v1 = vpop.f32.mrf.mxu1 }
 0x20f   :  { %v530_v38 = vadd.f32 %v529_v1, %v2214_v62  ;;  %v760_v57 = vmax.f32 %v691_v49, 0.0  ;;  %v679_v1 = vadd.f32 %v2353_v46, %v678_v9  ;;  %v754_v49 = vmax.f32 %v673_v26, 0.0 }
 0x210   :  { %v664_v9 = vadd.f32 %v2353_v46, %v2325_v7  ;;  %v652_v7 = vadd.f32 %v2353_v46, %v2309_v28 }
 0x211   :  { %1734 = vmatmul.msk.f32.gmra.mxu3 %vm537_vm0, %v530_v38 }
 0x214   :  { %v693_v35 = vpop.f32.mrf.mxu2 }
 0x215   :  { %v694_v51 = vadd.f32 %v2353_v46, %v693_v35  ;;  %v785_v35 = vpack.c.bf16 %v760_v57, %v759_v27  ;;  %v750_v57 = vmax.f32 %v661_v5, 0.0 }
 0x216   :  { %v531_v44 = vpop.f32.mrf.mxu1 }
 0x217   :  { %v532_v47 = vadd.f32 %v531_v44, %v2217_v2  ;;  %v761_v53 = vmax.f32 %v694_v51, 0.0  ;;  %v685_v2 = vadd.f32 %v2353_v46, %v684_v21  ;;  %v757_v44 = vmax.f32 %v682_v61, 0.0 }
 0x218   :  { %v670_v21 = vadd.f32 %v2353_v46, %v669_v24  ;;  %v658_v24 = vadd.f32 %v2353_v46, %v2317_v50 }
 0x219   :  { %1735 = vmatmul.msk.f32.gmra.mxu3 %vm537_vm0, %v532_v47  ;;  %v758_v38 = vmax.f32 %v685_v2, 0.0  ;;  %v756_v47 = vmax.f32 %v679_v1, 0.0  ;;  %v747_v1 = vmax.f32 %v652_v7, 0.0 }
 0x21a   :  { %v753_v3 = vmax.f32 %v670_v21, 0.0  ;;  %v749_v61 = vmax.f32 %v658_v24, 0.0 }
 0x21b   :  { %v784_v51 = vpack.c.bf16 %v758_v38, %v757_v44  ;;  %v779_v50 = vpack.c.bf16 %v748_v58, %v747_v1 }
 0x21c   :  { %v696_v55 = vpop.f32.mrf.mxu2  ;;  %v780_v27 = vpack.c.bf16 %v750_v57, %v749_v61 }
 0x21d   :  { %v697_v62 = vadd.f32 %v2353_v46, %v696_v55  ;;  %v755_v55 = vmax.f32 %v676_v31, 0.0 }
 0x21f   :  { %v762_v12 = vmax.f32 %v697_v62, 0.0  ;;  %v783_v62 = vpack.c.bf16 %v756_v47, %v755_v55 }
 0x221   :  { %v786_v23 = vpack.c.bf16 %v762_v12, %v761_v53  ;;  %v782_v53 = vpack.c.bf16 %v754_v49, %v753_v3  ;;  %v751_v12 = vmax.f32 %v664_v9, 0.0 }
 0x223   :  { %800 = vmatpush.bf16.msrb.mxu3 %v786_v23  ;;  %v781_v23 = vpack.c.bf16 %v752_v37, %v751_v12 }
 0x227   :  { %801 = vmatpush.bf16.msrb.mxu3 %v785_v35 }
 0x22b   :  { %802 = vmatpush.bf16.msrb.mxu3 %v784_v51 }
 0x22f   :  { %803 = vmatpush.bf16.msrb.mxu3 %v783_v62 }
 0x233   :  { %804 = vmatpush.bf16.msrb.mxu3 %v782_v53 }
 0x234   :  { %v2374_v2 = vpop.f32.mrf.mxu3 }
 0x237   :  { %805 = vmatpush.bf16.msrb.mxu3 %v781_v23  ;;  %v699_v23 = vpop.f32.mrf.mxu2 }
 0x23b   :  { %806 = vmatpush.bf16.msrb.mxu3 %v780_v27 }
 0x23c   :  { %v708_v38 = vpop.f32.mrf.mxu3 }
 0x23f   :  { %807 = vmatpush.bf16.msrb.mxu3 %v779_v50 }
 0x242   :  { %808 = vmatmul.bf16.vlgmr.msrb.gmra.mxu3 %v2027_v39 }
 0x244   :  { %v711_v35 = vpop.f32.mrf.mxu3 }
 0x24c   :  { %v714_v31 = vpop.f32.mrf.mxu3 }
 0x24d   :  { %v715_v1 = vadd.f32 %v2353_v46, %v714_v31 }
 0x252   :  { %813 = vmatmul.bf16.gmra.mxu3 %v2045_v45 }
 0x254   :  { %v717_v41 = vpop.f32.mrf.mxu3 }
 0x255   :  { %v718_v27 = vadd.f32 %v2353_v46, %v717_v41  ;;  %v706_v41 = vadd.f32 %v2353_v46, %v2374_v2 }
 0x25c   :  { %v720_v44 = vpop.f32.mrf.mxu3 }
 0x25d   :  { %v721_v7 = vadd.f32 %v2353_v46, %v720_v44 }
 0x25f   :  { %v770_v50 = vmax.f32 %v721_v7, 0.0 }
 0x262   :  { %818 = vmatmul.bf16.gmra.mxu3 %v2065_v52 }
 0x264   :  { %v723_v28 = vpop.f32.mrf.mxu3 }
 0x265   :  { %v724_v18 = vadd.f32 %v2353_v46, %v723_v28  ;;  %v709_v28 = vadd.f32 %v2353_v46, %v708_v38 }
 0x26c   :  { %v726_v26 = vpop.f32.mrf.mxu3 }
 0x26d   :  { %v727_v53 = vadd.f32 %v2353_v46, %v726_v26  ;;  %v712_v26 = vadd.f32 %v2353_v46, %v711_v35  ;;  %v700_v35 = vadd.f32 %v2353_v46, %v699_v23 }
 0x26f   :  { %v772_v61 = vmax.f32 %v727_v53, 0.0  ;;  %v767_v44 = vmax.f32 %v712_v26, 0.0 }
 0x272   :  { %823 = vmatmul.bf16.gmra.mxu3 %v2087_v60 }
 0x274   :  { %v729_v47 = vpop.f32.mrf.mxu3 }
 0x27c   :  { %v732_v51 = vpop.f32.mrf.mxu3 }
 0x27d   :  { %v733_v3 = vadd.f32 %v2353_v46, %v732_v51  ;;  %v769_v51 = vmax.f32 %v718_v27, 0.0 }
 0x27f   :  { %v774_v24 = vmax.f32 %v733_v3, 0.0 }
 0x282   :  { %828 = vmatmul.bf16.gmra.mxu3 %v2109_v4 }
 0x284   :  { %v735_v21 = vpop.f32.mrf.mxu3 }
 0x285   :  { %v736_v62 = vadd.f32 %v2353_v46, %v735_v21  ;;  %v768_v21 = vmax.f32 %v715_v1, 0.0 }
 0x287   :  { %v775_v37 = vmax.f32 %v736_v62, 0.0  ;;  %v763_v62 = vmax.f32 %v700_v35, 0.0 }
 0x28c   :  { %v738_v55 = vpop.f32.mrf.mxu3 }
 0x28d   :  { %v739_v49 = vadd.f32 %v2353_v46, %v738_v55  ;;  %v790_v55 = vpack.c.bf16 %v770_v50, %v769_v51 }
 0x28f   :  { %v776_v5 = vmax.f32 %v739_v49, 0.0  ;;  %v765_v49 = vmax.f32 %v706_v41, 0.0 }
 0x291   :  { %v793_v12 = vpack.c.bf16 %v776_v5, %v775_v37 }
 0x292   :  { %833 = vmatmul.bf16.gmra.mxu3 %v2131_v14  ;;  %v730_v14 = vadd.f32 %v2353_v46, %v729_v47 }
 0x294   :  { %v741_v39 = vpop.f32.mrf.mxu3  ;;  %v773_v57 = vmax.f32 %v730_v14, 0.0 }
 0x295   :  { %v742_v15 = vadd.f32 %v2353_v46, %v741_v39  ;;  %v702_v39 = vpop.f32.mrf.mxu2 }
 0x296   :  { %v792_v58 = vpack.c.bf16 %v774_v24, %v773_v57  ;;  %v703_v31 = vadd.f32 %v2353_v46, %v702_v39 }
 0x297   :  { %v777_v9 = vmax.f32 %v742_v15, 0.0  ;;  %v766_v15 = vmax.f32 %v709_v28, 0.0 }
 0x299   :  { %v788_v38 = vpack.c.bf16 %v766_v15, %v765_v49 }
 0x29c   :  { %v744_v45 = vpop.f32.mrf.mxu3 }
 0x29d   :  { %v745_v52 = vadd.f32 %v2353_v46, %v744_v45  ;;  %v789_v45 = vpack.c.bf16 %v768_v21, %v767_v44 }
 0x29f   :  { %v778_v60 = vmax.f32 %v745_v52, 0.0  ;;  %v764_v52 = vmax.f32 %v703_v31, 0.0 }
 0x2a1   :  { %v794_v4 = vpack.c.bf16 %v778_v60, %v777_v9  ;;  %v787_v9 = vpack.c.bf16 %v764_v52, %v763_v62 }
 0x2a2   :  { %838 = vmatmul.bf16.gmra.mxu3 %v2153_v25  ;;  %v771_v25 = vmax.f32 %v724_v18, 0.0 }
 0x2a3   :  { %889 = vmatpush.bf16.msrb.mxu2 %v794_v4 }
 0x2a4   :  { %v791_v47 = vpack.c.bf16 %v772_v61, %v771_v25 }
 0x2a7   :  { %890 = vmatpush.bf16.msrb.mxu2 %v793_v12 }
 0x2ab   :  { %891 = vmatpush.bf16.msrb.mxu2 %v792_v58 }
 0x2af   :  { %892 = vmatpush.bf16.msrb.mxu2 %v791_v47 }
 0x2b2   :  { %843 = vmatmul.bf16.gmra.mxu3 %v2175_v34 }
 0x2b3   :  { %893 = vmatpush.bf16.msrb.mxu2 %v790_v55 }
 0x2b7   :  { %894 = vmatpush.bf16.msrb.mxu2 %v789_v45 }
 0x2bb   :  { %895 = vmatpush.bf16.msrb.mxu2 %v788_v38 }
 0x2bf   :  { %896 = vmatpush.bf16.msrb.mxu2 %v787_v9 }
 0x2c2   :  { %897 = vmatmul.bf16.vlgmr.msrb.gmra.mxu2 %v2055_v48  ;;  %848 = vmatmul.bf16.gmra.mxu3 %v1941_v10  ;;  %v798_v10 = vld [vmem:[%s2714_s4 + $0x18] sm:$0xff] }
 0x2c3   :  { %1089 = vmatpush.msrb.mxu0 %v798_v10  ;;  %1828 = vmatpush.msra.mxu3 %v798_v10 }
 0x2c5   :  { %v809_v48 = vpop.f32.mrf.mxu3 }
 0x2d2   :  { %902 = vmatmul.bf16.gmra.mxu2 %v2077_v56  ;;  %853 = vmatmul.bf16.gmra.mxu3 %v1950_v13  ;;  %v797_v13 = vld [vmem:[%s2714_s4 + $0x10] sm:$0xff]  ;;  %v795_v56 = vld [vmem:[%s2714_s4] sm:$0xff] }
 0x2d3   :  { %1090 = vmatpush.msrb.mxu0 %v797_v13  ;;  %1829 = vmatpush.msra.mxu3 %v797_v13 }
 0x2e2   :  { %907 = vmatmul.bf16.gmra.mxu2 %v2099_v0  ;;  %858 = vmatmul.bf16.gmra.mxu3 %v1959_v16  ;;  %v796_v16 = vld [vmem:[%s2714_s4 + $0x8] sm:$0xff] }
 0x2e3   :  { %1091 = vmatpush.msrb.mxu0 %v796_v16  ;;  %1830 = vmatpush.msra.mxu3 %v796_v16 }
 0x2e5   :  { %1092 = vmatpush.msrb.mxu0 %v795_v56  ;;  %1831 = vmatpush.msra.mxu3 %v795_v56 }
 0x2f2   :  { %912 = vmatmul.bf16.gmra.mxu2 %v2121_v8  ;;  %863 = vmatmul.bf16.gmra.mxu3 %v1968_v19  ;;  %v811_v19 = vpop.f32.mrf.mxu3 }
 0x2fa   :  { %v814_v0 = vpop.f32.mrf.mxu3 }
 0x302   :  { %917 = vmatmul.bf16.gmra.mxu2 %v2143_v20  ;;  %868 = vmatmul.bf16.gmra.mxu3 %v1977_v22  ;;  %v816_v8 = vpop.f32.mrf.mxu3 }
 0x30a   :  { %v819_v20 = vpop.f32.mrf.mxu3 }
 0x312   :  { %922 = vmatmul.bf16.gmra.mxu2 %v2165_v30  ;;  %873 = vmatmul.bf16.gmra.mxu3 %v1998_v29  ;;  %v821_v34 = vpop.f32.mrf.mxu3 }
 0x31a   :  { %v824_v46 = vpop.f32.mrf.mxu3 }
 0x322   :  { %927 = vmatmul.bf16.gmra.mxu2 %v2193_v43  ;;  %878 = vmatmul.bf16.gmra.mxu3 %v2019_v36  ;;  %v826_v60 = vpop.f32.mrf.mxu3 }
 0x32a   :  { %v829_v3 = vpop.f32.mrf.mxu3 }
 0x332   :  { %932 = vmatmul.bf16.gmra.mxu2 %v2212_v59  ;;  %883 = vmatmul.bf16.gmra.mxu3 %v2037_v42  ;;  %v831_v4 = vpop.f32.mrf.mxu3 }
 0x33a   :  { %v834_v37 = vpop.f32.mrf.mxu3 }
 0x342   :  { %937 = vmatmul.bf16.gmra.mxu2 %v2225_v11  ;;  %v836_v24 = vpop.f32.mrf.mxu3 }
 0x345   :  { %v898_v30 = vpop.f32.mrf.mxu2 }
 0x346   :  { %v899_v22 = vadd.f32 %v898_v30, %v809_v48 }
 0x348   :  { %1736 = vmatmul.msk.f32.vlgmr.msrb.gmra.mxu0 %vm537_vm0, %v899_v22 }
 0x34d   :  { %v900_v43 = vpop.f32.mrf.mxu2 }
 0x34e   :  { %v901_v2 = vadd.f32 %v900_v43, %v811_v19 }
 0x350   :  { %1737 = vmatmul.msk.f32.gmra.mxu0 %vm537_vm0, %v901_v2 }
 0x352   :  { %942 = vmatmul.bf16.gmra.mxu2 %v2236_v32 }
 0x355   :  { %v903_v59 = vpop.f32.mrf.mxu2 }
 0x356   :  { %v904_v29 = vadd.f32 %v903_v59, %v814_v0 }
 0x358   :  { %1738 = vmatmul.msk.f32.gmra.mxu0 %vm537_vm0, %v904_v29 }
 0x35d   :  { %v905_v11 = vpop.f32.mrf.mxu2 }
 0x35e   :  { %v906_v36 = vadd.f32 %v905_v11, %v816_v8 }
 0x360   :  { %1739 = vmatmul.msk.f32.gmra.mxu0 %vm537_vm0, %v906_v36 }
 0x362   :  { %947 = vmatmul.bf16.gmra.mxu2 %v2247_v54  ;;  %v839_v54 = vpop.f32.mrf.mxu3 }
 0x365   :  { %v908_v5 = vpop.f32.mrf.mxu2 }
 0x366   :  { %v909_v14 = vadd.f32 %v908_v5, %v819_v20 }
 0x368   :  { %1740 = vmatmul.msk.f32.gmra.mxu0 %vm537_vm0, %v909_v14 }
 0x36a   :  { %v841_v61 = vpop.f32.mrf.mxu3 }
 0x36d   :  { %v910_v32 = vpop.f32.mrf.mxu2 }
 0x36e   :  { %v911_v53 = vadd.f32 %v910_v32, %v821_v34 }
 0x370   :  { %1741 = vmatmul.msk.f32.gmra.mxu0 %vm537_vm0, %v911_v53 }
 0x372   :  { %952 = vmatmul.bf16.gmra.mxu2 %v2258_v17  ;;  %v844_v17 = vpop.f32.mrf.mxu3 }
 0x375   :  { %v913_v42 = vpop.f32.mrf.mxu2 }
 0x376   :  { %v914_v12 = vadd.f32 %v913_v42, %v824_v46 }
 0x378   :  { %1742 = vmatmul.msk.f32.gmra.mxu0 %vm537_vm0, %v914_v12 }
 0x37a   :  { %v846_v50 = vpop.f32.mrf.mxu3 }
 0x37d   :  { %v915_v18 = vpop.f32.mrf.mxu2 }
 0x37e   :  { %v916_v57 = vadd.f32 %v915_v18, %v826_v60 }
 0x380   :  { %1743 = vmatmul.msk.f32.gmra.mxu0 %vm537_vm0, %v916_v57 }
 0x382   :  { %957 = vmatmul.bf16.gmra.mxu2 %v2269_v40  ;;  %v849_v28 = vpop.f32.mrf.mxu3 }
 0x385   :  { %v918_v23 = vpop.f32.mrf.mxu2 }
 0x386   :  { %v919_v7 = vadd.f32 %v918_v23, %v829_v3 }
 0x388   :  { %1744 = vmatmul.msk.f32.gmra.mxu0 %vm537_vm0, %v919_v7 }
 0x38d   :  { %v920_v58 = vpop.f32.mrf.mxu2 }
 0x38e   :  { %v921_v27 = vadd.f32 %v920_v58, %v831_v4 }
 0x390   :  { %1745 = vmatmul.msk.f32.gmra.mxu0 %vm537_vm0, %v921_v27 }
 0x392   :  { %962 = vmatmul.bf16.gmra.mxu2 %v2280_v6  ;;  %v851_v6 = vpop.f32.mrf.mxu3 }
 0x395   :  { %v923_v25 = vpop.f32.mrf.mxu2 }
 0x396   :  { %v924_v1 = vadd.f32 %v923_v25, %v834_v37 }
 0x398   :  { %1746 = vmatmul.msk.f32.gmra.mxu0 %vm537_vm0, %v924_v1 }
 0x39a   :  { %v854_v44 = vpop.f32.mrf.mxu3 }
 0x39d   :  { %v925_v47 = vpop.f32.mrf.mxu2 }
 0x39e   :  { %v926_v26 = vadd.f32 %v925_v47, %v836_v24 }
 0x3a0   :  { %1747 = vmatmul.msk.f32.gmra.mxu0 %vm537_vm0, %v926_v26 }
 0x3a2   :  { %967 = vmatmul.bf16.gmra.mxu2 %v2291_v33  ;;  %v2460_v33 = vld [vmem:[%s2715_s5] ss:$0 sm:$0xff]  ;;  %v856_v45 = vpop.f32.mrf.mxu3 }
 0x3a5   :  { %v928_v40 = vpop.f32.mrf.mxu2 }
 0x3a6   :  { %v929_v51 = vadd.f32 %v928_v40, %v839_v54 }
 0x3a8   :  { %1748 = vmatmul.msk.f32.gmra.mxu0 %vm537_vm0, %v929_v51 }
 0x3aa   :  { %v859_v16 = vpop.f32.mrf.mxu3 }
 0x3ad   :  { %v930_v21 = vpop.f32.mrf.mxu2 }
 0x3ae   :  { %v931_v55 = vadd.f32 %v930_v21, %v841_v61 }
 0x3b0   :  { %1749 = vmatmul.msk.f32.gmra.mxu0 %vm537_vm0, %v931_v55 }
 0x3b2   :  { %972 = vmatmul.bf16.gmra.mxu2 %v2302_v63  ;;  %v861_v34 = vpop.f32.mrf.mxu3 }
 0x3b5   :  { %v933_v39 = vpop.f32.mrf.mxu2 }
 0x3b6   :  { %v934_v41 = vadd.f32 %v933_v39, %v844_v17 }
 0x3b8   :  { %1750 = vmatmul.msk.f32.gmra.mxu0 %vm537_vm0, %v934_v41 }
 0x3ba   :  { %v864_v11 = vpop.f32.mrf.mxu3 }
 0x3bd   :  { %v935_v31 = vpop.f32.mrf.mxu2 }
 0x3be   :  { %v936_v15 = vadd.f32 %v935_v31, %v846_v50 }
 0x3c0   :  { %1751 = vmatmul.msk.f32.gmra.mxu0 %vm537_vm0, %v936_v15 }
 0x3c2   :  { %v866_v53 = vpop.f32.mrf.mxu3 }
 0x3c5   :  { %v938_v35 = vpop.f32.mrf.mxu2  ;;  %v1094_v49 = vpop.f32.mrf.mxu0 }
 0x3c6   :  { %v939_v52 = vadd.f32 %v938_v35, %v849_v28  ;;  %v1095_v63 = vadd.f32 %v2460_v33, %v1094_v49 }
 0x3c8   :  { %1752 = vmatmul.msk.f32.gmra.mxu0 %vm537_vm0, %v939_v52  ;;  %v1190_v38 = vmax.f32 %v1095_v63, 0.0 }
 0x3ca   :  { %v1222_v62 = vsel %vm537_vm0, %v1190_v38, 0.0  ;;  %v869_v27 = vpop.f32.mrf.mxu3 }
 0x3cb   :  { %1223 = vadd.xlane.f32.xlu0 %v1222_v62 }
 0x3cd   :  { %v940_v9 = vpop.f32.mrf.mxu2  ;;  %v1097_v10 = vpop.f32.mrf.mxu0 }
 0x3ce   :  { %v941_v48 = vadd.f32 %v940_v9, %v851_v6  ;;  %v1098_v13 = vadd.f32 %v2460_v33, %v1097_v10 }
 0x3d0   :  { %v1191_v19 = vmax.f32 %v1098_v13, 0.0  ;;  %1753 = vmatmul.msk.f32.gmra.mxu0 %vm537_vm0, %v941_v48 }
 0x3d2   :  { %v1225_v56 = vsel %vm537_vm0, %v1191_v19, 0.0  ;;  %v871_v51 = vpop.f32.mrf.mxu3 }
 0x3d3   :  { %1226 = vadd.xlane.f32.xlu0 %v1225_v56 }
 0x3d5   :  { %v943_v0 = vpop.f32.mrf.mxu2  ;;  %v1100_v8 = vpop.f32.mrf.mxu0 }
 0x3d6   :  { %v944_v20 = vadd.f32 %v943_v0, %v854_v44  ;;  %v1101_v30 = vadd.f32 %v2460_v33, %v1100_v8 }
 0x3d8   :  { %1754 = vmatmul.msk.f32.gmra.mxu0 %vm537_vm0, %v944_v20  ;;  %v1192_v22 = vmax.f32 %v1101_v30, 0.0 }
 0x3da   :  { %v1228_v43 = vsel %vm537_vm0, %v1192_v22, 0.0  ;;  %v874_v44 = vpop.f32.mrf.mxu3 }
 0x3db   :  { %1229 = vadd.xlane.f32.xlu1 %v1228_v43 }
 0x3dd   :  { %v945_v46 = vpop.f32.mrf.mxu2  ;;  %v1103_v2 = vpop.f32.mrf.mxu0 }
 0x3de   :  { %v946_v59 = vadd.f32 %v945_v46, %v856_v45  ;;  %v1104_v60 = vadd.f32 %v2460_v33, %v1103_v2 }
 0x3e0   :  { %v1193_v29 = vmax.f32 %v1104_v60, 0.0  ;;  %1755 = vmatmul.msk.f32.gmra.mxu0 %vm537_vm0, %v946_v59 }
 0x3e2   :  { %v1231_v3 = vsel %vm537_vm0, %v1193_v29, 0.0  ;;  %v876_v38 = vpop.f32.mrf.mxu3 }
 0x3e3   :  { %1232 = vadd.xlane.f32.xlu1 %v1231_v3 }
 0x3e5   :  { %v948_v36 = vpop.f32.mrf.mxu2  ;;  %v1106_v5 = vpop.f32.mrf.mxu0 }
 0x3e6   :  { %v949_v4 = vadd.f32 %v948_v36, %v859_v16  ;;  %v1107_v14 = vadd.f32 %v2460_v33, %v1106_v5 }
 0x3e8   :  { %1756 = vmatmul.msk.f32.gmra.mxu0 %vm537_vm0, %v949_v4  ;;  %v1194_v32 = vmax.f32 %v1107_v14, 0.0 }
 0x3ea   :  { %v1234_v37 = vsel %vm537_vm0, %v1194_v32, 0.0  ;;  %v879_v20 = vpop.f32.mrf.mxu3 }
 0x3eb   :  { %1235 = vadd.xlane.f32.xlu2 %v1234_v37 }
 0x3ed   :  { %v950_v42 = vpop.f32.mrf.mxu2  ;;  %v1109_v24 = vpop.f32.mrf.mxu0 }
 0x3ee   :  { %v951_v12 = vadd.f32 %v950_v42, %v861_v34  ;;  %v1110_v18 = vadd.f32 %v2460_v33, %v1109_v24 }
 0x3f0   :  { %v1195_v57 = vmax.f32 %v1110_v18, 0.0  ;;  %1757 = vmatmul.msk.f32.gmra.mxu0 %vm537_vm0, %v951_v12 }
 0x3f2   :  { %v1237_v54 = vsel %vm537_vm0, %v1195_v57, 0.0  ;;  %v881_v60 = vpop.f32.mrf.mxu3 }
 0x3f3   :  { %1238 = vadd.xlane.f32.xlu2 %v1237_v54 }
 0x3f5   :  { %v953_v23 = vpop.f32.mrf.mxu2  ;;  %v1112_v7 = vpop.f32.mrf.mxu0 }
 0x3f6   :  { %v954_v61 = vadd.f32 %v953_v23, %v864_v11  ;;  %v1113_v58 = vadd.f32 %v2460_v33, %v1112_v7 }
 0x3f8   :  { %v1196_v17 = vmax.f32 %v1113_v58, 0.0  ;;  %1758 = vmatmul.msk.f32.gmra.mxu0 %vm537_vm0, %v954_v61 }
 0x3fa   :  { %v1240_v25 = vsel %vm537_vm0, %v1196_v17, 0.0  ;;  %v884_v14 = vpop.f32.mrf.mxu3 }
 0x3fb   :  { %1241 = vadd.xlane.f32.xlu0 %v1240_v25 }
 0x3fd   :  { %v955_v1 = vpop.f32.mrf.mxu2  ;;  %v1115_v50 = vpop.f32.mrf.mxu0 }
 0x3fe   :  { %v956_v47 = vadd.f32 %v955_v1, %v866_v53  ;;  %v1116_v26 = vadd.f32 %v2460_v33, %v1115_v50 }
 0x400   :  { %v1197_v40 = vmax.f32 %v1116_v26, 0.0  ;;  %1759 = vmatmul.msk.f32.gmra.mxu0 %vm537_vm0, %v956_v47 }
 0x402   :  { %v1243_v28 = vsel %vm537_vm0, %v1197_v40, 0.0  ;;  %v886_v57 = vpop.f32.mrf.mxu3 }
 0x403   :  { %1244 = vadd.xlane.f32.xlu1 %v1243_v28 }
 0x405   :  { %v958_v21 = vpop.f32.mrf.mxu2  ;;  %v1118_v55 = vpop.f32.mrf.mxu0 }
 0x406   :  { %v959_v6 = vadd.f32 %v958_v21, %v869_v27  ;;  %v1119_v39 = vadd.f32 %v2460_v33, %v1118_v55 }
 0x408   :  { %v1198_v41 = vmax.f32 %v1119_v39, 0.0  ;;  %1760 = vmatmul.msk.f32.gmra.mxu0 %vm537_vm0, %v959_v6 }
 0x40a   :  { %v1246_v31 = vsel %vm537_vm0, %v1198_v41, 0.0 }
 0x40b   :  { %1247 = vadd.xlane.f32.xlu2 %v1246_v31 }
 0x40d   :  { %v960_v15 = vpop.f32.mrf.mxu2  ;;  %v1121_v45 = vpop.f32.mrf.mxu0 }
 0x40e   :  { %v961_v35 = vadd.f32 %v960_v15, %v871_v51  ;;  %v1122_v49 = vadd.f32 %v2460_v33, %v1121_v45 }
 0x410   :  { %v1199_v52 = vmax.f32 %v1122_v49, 0.0  ;;  %1761 = vmatmul.msk.f32.gmra.mxu0 %vm537_vm0, %v961_v35 }
 0x412   :  { %v1249_v63 = vsel %vm537_vm0, %v1199_v52, 0.0 }
 0x413   :  { %1250 = vadd.xlane.f32.xlu0 %v1249_v63 }
 0x415   :  { %v963_v62 = vpop.f32.mrf.mxu2  ;;  %v1124_v9 = vpop.f32.mrf.mxu0 }
 0x416   :  { %v964_v10 = vadd.f32 %v963_v62, %v874_v44  ;;  %v1125_v48 = vadd.f32 %v2460_v33, %v1124_v9 }
 0x418   :  { %v1200_v13 = vmax.f32 %v1125_v48, 0.0  ;;  %1762 = vmatmul.msk.f32.gmra.mxu0 %vm537_vm0, %v964_v10 }
 0x41a   :  { %v1252_v16 = vsel %vm537_vm0, %v1200_v13, 0.0 }
 0x41b   :  { %1253 = vadd.xlane.f32.xlu1 %v1252_v16 }
 0x41d   :  { %v965_v19 = vpop.f32.mrf.mxu2  ;;  %v1127_v56 = vpop.f32.mrf.mxu0 }
 0x41e   :  { %v966_v0 = vadd.f32 %v965_v19, %v876_v38  ;;  %v1128_v8 = vadd.f32 %v2460_v33, %v1127_v56 }
 0x420   :  { %v1201_v30 = vmax.f32 %v1128_v8, 0.0  ;;  %1763 = vmatmul.msk.f32.gmra.mxu0 %vm537_vm0, %v966_v0 }
 0x422   :  { %v1255_v34 = vsel %vm537_vm0, %v1201_v30, 0.0 }
 0x423   :  { %1256 = vadd.xlane.f32.xlu2 %v1255_v34 }
 0x425   :  { %v968_v22 = vpop.f32.mrf.mxu2  ;;  %v1130_v43 = vpop.f32.mrf.mxu0 }
 0x426   :  { %v969_v46 = vadd.f32 %v968_v22, %v879_v20  ;;  %v1131_v2 = vadd.f32 %v2460_v33, %v1130_v43 }
 0x428   :  { %v1202_v59 = vmax.f32 %v1131_v2, 0.0  ;;  %1764 = vmatmul.msk.f32.gmra.mxu0 %vm537_vm0, %v969_v46 }
 0x42a   :  { %v1258_v29 = vsel %vm537_vm0, %v1202_v59, 0.0 }
 0x42b   :  { %1259 = vadd.xlane.f32.xlu0 %v1258_v29 }
 0x42d   :  { %v970_v11 = vpop.f32.mrf.mxu2  ;;  %v1133_v3 = vpop.f32.mrf.mxu0 }
 0x42e   :  { %v971_v36 = vadd.f32 %v970_v11, %v881_v60  ;;  %v1134_v5 = vadd.f32 %v2460_v33, %v1133_v3 }
 0x430   :  { %v1203_v4 = vmax.f32 %v1134_v5, 0.0  ;;  %1765 = vmatmul.msk.f32.gmra.mxu0 %vm537_vm0, %v971_v36 }
 0x432   :  { %v1261_v32 = vsel %vm537_vm0, %v1203_v4, 0.0 }
 0x433   :  { %1262 = vadd.xlane.f32.xlu1 %v1261_v32 }
 0x435   :  { %v973_v37 = vpop.f32.mrf.mxu2  ;;  %v1136_v53 = vpop.f32.mrf.mxu0 }
 0x436   :  { %v974_v42 = vadd.f32 %v973_v37, %v884_v14  ;;  %v1137_v24 = vadd.f32 %v2460_v33, %v1136_v53 }
 0x438   :  { %v1204_v12 = vmax.f32 %v1137_v24, 0.0  ;;  %1766 = vmatmul.msk.f32.gmra.mxu0 %vm537_vm0, %v974_v42 }
 0x43a   :  { %v1264_v18 = vsel %vm537_vm0, %v1204_v12, 0.0 }
 0x43b   :  { %1265 = vadd.xlane.f32.xlu2 %v1264_v18 }
 0x43d   :  { %v975_v54 = vpop.f32.mrf.mxu2  ;;  %v1139_v23 = vpop.f32.mrf.mxu0 }
 0x43e   :  { %v976_v7 = vadd.f32 %v975_v54, %v886_v57  ;;  %v1140_v61 = vadd.f32 %v2460_v33, %v1139_v23 }
 0x440   :  { %v1205_v58 = vmax.f32 %v1140_v61, 0.0  ;;  %1767 = vmatmul.msk.f32.vlgmr.msra.gmra.mxu3 %vm537_vm0, %v976_v7 }
 0x442   :  { %v1267_v27 = vsel %vm537_vm0, %v1205_v58, 0.0 }
 0x443   :  { %1268 = vadd.xlane.f32.xlu0 %v1267_v27 }
 0x445   :  { %v1142_v17 = vpop.f32.mrf.mxu0 }
 0x446   :  { %v1143_v25 = vadd.f32 %v2460_v33, %v1142_v17 }
 0x448   :  { %v1206_v1 = vmax.f32 %v1143_v25, 0.0  ;;  %v1224_v25 = vpop.xlane.xlu0 %1223 }
 0x44a   :  { %v1270_v50 = vsel %vm537_vm0, %v1206_v1, 0.0  ;;  %v1864_v1 = vmov 32.0  }
 0x44b   :  { %1271 = vadd.xlane.f32.xlu1 %v1270_v50  ;;  %1836 = vrcp.f32 %v1864_v1  ;;  %v1367_v1 = vld [vmem:[%s2716_s6 + $0x50] sm:$0xff] }
 0x44d   :  { %v1145_v47 = vpop.f32.mrf.mxu0 }
 0x44e   :  { %v1146_v26 = vadd.f32 %v2460_v33, %v1145_v47  ;;  %v1230_v50 = vpop.xlane.xlu1 %1229 }
 0x450   :  { %v1207_v40 = vmax.f32 %v1146_v26, 0.0 }
 0x451   :  { %v1837_v26 = vpop.eup %1836 }
 0x452   :  { %v1273_v51 = vsel %vm537_vm0, %v1207_v40, 0.0  ;;  %v1319_v40 = vmul.f32 32.0, %v1837_v26  ;;  %vm1323_vm1 = vweird.f32 %v1837_v26 }
 0x453   :  { %1274 = vadd.xlane.f32.xlu2 %v1273_v51  ;;  %v1227_v51 = vpop.xlane.xlu0 %1226 }
 0x455   :  { %v1148_v28 = vpop.f32.mrf.mxu0 }
 0x456   :  { %v1149_v21 = vadd.f32 %v2460_v33, %v1148_v28  ;;  %v1320_v28 = vsub.f32 1.0, %v1319_v40 }
 0x458   :  { %v1208_v55 = vmax.f32 %v1149_v21, 0.0  ;;  %v1233_v21 = vpop.xlane.xlu1 %1232 }
 0x45a   :  { %v1276_v6 = vsel %vm537_vm0, %v1208_v55, 0.0 }
 0x45b   :  { %1277 = vadd.xlane.f32.xlu0 %v1276_v6  ;;  %v1321_v6 = vmul.f32 %v1837_v26, %v1320_v28  ;;  %v1368_v28 = vld [vmem:[%s2716_s6 + $0x58] sm:$0xff] }
 0x45d   :  { %v1151_v39 = vpop.f32.mrf.mxu0 }
 0x45e   :  { %v1152_v41 = vadd.f32 %v2460_v33, %v1151_v39  ;;  %v1236_v47 = vpop.xlane.xlu2 %1235 }
 0x460   :  { %v1209_v44 = vmax.f32 %v1152_v41, 0.0  ;;  %v1322_v41 = vadd.f32 %v1837_v26, %v1321_v6 }
 0x462   :  { %v1279_v31 = vsel %vm537_vm0, %v1209_v44, 0.0 }
 0x463   :  { %1280 = vadd.xlane.f32.xlu1 %v1279_v31  ;;  %v2542_v31 = vsel %vm1323_vm1, %v1837_v26, %v1322_v41 }
 0x465   :  { %v1154_v15 = vpop.f32.mrf.mxu0 }
 0x466   :  { %v1155_v45 = vadd.f32 %v2460_v33, %v1154_v15  ;;  %v1239_v55 = vpop.xlane.xlu2 %1238 }
 0x468   :  { %v1210_v35 = vmax.f32 %v1155_v45, 0.0  ;;  %v1326_v45 = vmul.f32 %v2542_v31, %v1227_v51 }
 0x46a   :  { %v1282_v49 = vsel %vm537_vm0, %v1210_v35, 0.0  ;;  %v1358_v35 = vld [vmem:[%s2716_s6 + $0x8] sm:$0xff] }
 0x46b   :  { %1283 = vadd.xlane.f32.xlu2 %v1282_v49  ;;  %v1325_v49 = vmul.f32 %v2542_v31, %v1224_v25 }
 0x46d   :  { %v1157_v52 = vpop.f32.mrf.mxu0 }
 0x46e   :  { %v1158_v63 = vadd.f32 %v2460_v33, %v1157_v52  ;;  %v1242_v39 = vpop.xlane.xlu0 %1241  ;;  %v1327_v52 = vmul.f32 %v2542_v31, %v1230_v50 }
 0x470   :  { %v1211_v38 = vmax.f32 %v1158_v63, 0.0  ;;  %v1357_v63 = vld [vmem:[%s2716_s6] sm:$0xff] }
 0x472   :  { %v1285_v62 = vsel %vm537_vm0, %v1211_v38, 0.0  ;;  %v1359_v38 = vld [vmem:[%s2716_s6 + $0x10] sm:$0xff] }
 0x473   :  { %1286 = vadd.xlane.f32.xlu0 %v1285_v62 }
 0x475   :  { %v1160_v9 = vpop.f32.mrf.mxu0 }
 0x476   :  { %v1161_v10 = vadd.f32 %v2460_v33, %v1160_v9  ;;  %v1245_v44 = vpop.xlane.xlu1 %1244  ;;  %v1390_v9 = vmul.f32 %v1358_v35, %v1326_v45 }
 0x478   :  { %v1212_v48 = vmax.f32 %v1161_v10, 0.0  ;;  %v1328_v10 = vmul.f32 %v2542_v31, %v1233_v21 }
 0x47a   :  { %v1288_v13 = vsel %vm537_vm0, %v1212_v48, 0.0  ;;  %v1360_v48 = vld [vmem:[%s2716_s6 + $0x18] sm:$0xff] }
 0x47b   :  { %1289 = vadd.xlane.f32.xlu1 %v1288_v13 }
 0x47d   :  { %v1163_v16 = vpop.f32.mrf.mxu0 }
 0x47e   :  { %v1164_v19 = vadd.f32 %v2460_v33, %v1163_v16  ;;  %v1389_v16 = vmul.f32 %v1357_v63, %v1325_v49 }
 0x480   :  { %v1213_v56 = vmax.f32 %v1164_v19, 0.0  ;;  %v1391_v19 = vmul.f32 %v1359_v38, %v1327_v52  ;;  %v1370_v52 = vld [vmem:[%s2716_s6 + $0x68] sm:$0xff] }
 0x482   :  { %v1291_v0 = vsel %vm537_vm0, %v1213_v56, 0.0  ;;  %v1329_v56 = vmul.f32 %v2542_v31, %v1236_v47 }
 0x483   :  { %1292 = vadd.xlane.f32.xlu2 %v1291_v0  ;;  %v1361_v0 = vld [vmem:[%s2716_s6 + $0x20] sm:$0xff] }
 0x485   :  { %v1166_v8 = vpop.f32.mrf.mxu0 }
 0x486   :  { %v1167_v20 = vadd.f32 %v2460_v33, %v1166_v8  ;;  %v1251_v15 = vpop.xlane.xlu0 %1250 }
 0x488   :  { %v1214_v30 = vmax.f32 %v1167_v20, 0.0  ;;  %v1423_v20 = vsel %vm1421_vm2, %v1390_v9, 0.0 }
 0x48a   :  { %v1294_v34 = vsel %vm537_vm0, %v1214_v30, 0.0  ;;  %v1392_v30 = vmul.f32 %v1360_v48, %v1328_v10  ;;  %v1371_v10 = vld [vmem:[%s2716_s6 + $0x70] sm:$0xff] }
 0x48b   :  { %1295 = vadd.xlane.f32.xlu0 %v1294_v34  ;;  %v1330_v34 = vmul.f32 %v2542_v31, %v1239_v55 }
 0x48d   :  { %v1169_v22 = vpop.f32.mrf.mxu0 }
 0x48e   :  { %v1170_v43 = vadd.f32 %v2460_v33, %v1169_v22  ;;  %v1254_v62 = vpop.xlane.xlu1 %1253  ;;  %v1362_v22 = vld [vmem:[%s2716_s6 + $0x28] sm:$0xff] }
 0x490   :  { %v1215_v46 = vmax.f32 %v1170_v43, 0.0  ;;  %v1422_v43 = vsel %vm1421_vm2, %v1389_v16, 0.0 }
 0x492   :  { %v1297_v2 = vsel %vm537_vm0, %v1215_v46, 0.0  ;;  %v1425_v46 = vsel %vm1421_vm2, %v1391_v19, 0.0 }
 0x493   :  { %1298 = vadd.xlane.f32.xlu1 %v1297_v2  ;;  %v1393_v2 = vmul.f32 %v1361_v0, %v1329_v56  ;;  %v1372_v0 = vld [vmem:[%s2716_s6 + $0x78] sm:$0xff] }
 0x495   :  { %v1172_v59 = vpop.f32.mrf.mxu0 }
 0x496   :  { %v1173_v60 = vadd.f32 %v2460_v33, %v1172_v59  ;;  %v1331_v59 = vmul.f32 %v2542_v31, %v1242_v39 }
 0x498   :  { %v1216_v29 = vmax.f32 %v1173_v60, 0.0  ;;  %v1424_v60 = vadd.f32 %v1423_v20, %v1422_v43  ;;  %v1373_v43 = vld [vmem:[%s2716_s6 + $0x80] sm:$0xff] }
 0x49a   :  { %v1300_v11 = vsel %vm537_vm0, %v1216_v29, 0.0  ;;  %v1363_v29 = vld [vmem:[%s2716_s6 + $0x30] sm:$0xff] }
 0x49b   :  { %1301 = vadd.xlane.f32.xlu2 %v1300_v11 }
 0x49d   :  { %v1175_v3 = vpop.f32.mrf.mxu0 }
 0x49e   :  { %v1176_v36 = vadd.f32 %v2460_v33, %v1175_v3  ;;  %v1260_v8 = vpop.xlane.xlu0 %1259  ;;  %v1427_v3 = vsel %vm1421_vm2, %v1392_v30, 0.0 }
 0x49f   :  { %v1337_v39 = vmul.f32 %v2542_v31, %v1260_v8 }
 0x4a0   :  { %v1217_v5 = vmax.f32 %v1176_v36, 0.0  ;;  %v1394_v36 = vmul.f32 %v1362_v22, %v1330_v34 }
 0x4a2   :  { %v1303_v4 = vsel %vm537_vm0, %v1217_v5, 0.0  ;;  %v1332_v5 = vmul.f32 %v2542_v31, %v1245_v44  ;;  %v1369_v44 = vld [vmem:[%s2716_s6 + $0x60] sm:$0xff] }
 0x4a3   :  { %1304 = vadd.xlane.f32.xlu0 %v1303_v4  ;;  %v1426_v4 = vadd.f32 %v1425_v46, %v1424_v60  ;;  %v1401_v38 = vmul.f32 %v1369_v44, %v1337_v39  ;;  %v1380_v44 = vld [vmem:[%s2716_s6 + $0xb8] sm:$0xff] }
 0x4a5   :  { %v1178_v14 = vpop.f32.mrf.mxu0  ;;  %v1445_v20 = vsel %vm1421_vm2, %v1401_v38, 0.0 }
 0x4a6   :  { %v1179_v32 = vadd.f32 %v2460_v33, %v1178_v14  ;;  %v1263_v11 = vpop.xlane.xlu1 %1262  ;;  %v1364_v14 = vld [vmem:[%s2716_s6 + $0x38] sm:$0xff] }
 0x4a7   :  { %v1338_v35 = vmul.f32 %v2542_v31, %v1263_v11  ;;  %v1374_v11 = vld [vmem:[%s2716_s6 + $0x88] sm:$0xff] }
 0x4a8   :  { %v1218_v37 = vmax.f32 %v1179_v32, 0.0 }
 0x4a9   :  { %v1402_v16 = vmul.f32 %v1370_v52, %v1338_v35  ;;  %v1381_v52 = vld [vmem:[%s2716_s6 + $0xc0] sm:$0xff] }
 0x4aa   :  { %v1306_v53 = vsel %vm537_vm0, %v1218_v37, 0.0  ;;  %v1429_v37 = vsel %vm1421_vm2, %v1393_v2, 0.0 }
 0x4ab   :  { %1307 = vadd.xlane.f32.xlu1 %v1306_v53  ;;  %v1395_v53 = vmul.f32 %v1363_v29, %v1331_v59  ;;  %v1447_v2 = vsel %vm1421_vm2, %v1402_v16, 0.0 }
 0x4ad   :  { %v1181_v42 = vpop.f32.mrf.mxu0 }
 0x4ae   :  { %v1182_v24 = vadd.f32 %v2460_v33, %v1181_v42 }
 0x4b0   :  { %v1219_v12 = vmax.f32 %v1182_v24, 0.0  ;;  %v1428_v24 = vadd.f32 %v1427_v3, %v1426_v4 }
 0x4b2   :  { %v1309_v18 = vsel %vm537_vm0, %v1219_v12, 0.0  ;;  %v1365_v12 = vld [vmem:[%s2716_s6 + $0x40] sm:$0xff] }
 0x4b3   :  { %1310 = vadd.xlane.f32.xlu2 %v1309_v18 }
 0x4b5   :  { %v1184_v57 = vpop.f32.mrf.mxu0 }
 0x4b6   :  { %v1185_v54 = vadd.f32 %v2460_v33, %v1184_v57  ;;  %v1269_v18 = vpop.xlane.xlu0 %1268  ;;  %v1431_v57 = vsel %vm1421_vm2, %v1394_v36, 0.0 }
 0x4b7   :  { %v1340_v19 = vmul.f32 %v2542_v31, %v1269_v18 }
 0x4b8   :  { %v1220_v23 = vmax.f32 %v1185_v54, 0.0  ;;  %v1396_v54 = vmul.f32 %v1364_v14, %v1332_v5  ;;  %v1375_v14 = vld [vmem:[%s2716_s6 + $0x90] sm:$0xff] }
 0x4b9   :  { %v1404_v59 = vmul.f32 %v1372_v0, %v1340_v19  ;;  %v1383_v0 = vld [vmem:[%s2716_s6 + $0xd0] sm:$0xff] }
 0x4ba   :  { %v1312_v7 = vsel %vm537_vm0, %v1220_v23, 0.0  ;;  %v1334_v23 = vmul.f32 %v2542_v31, %v1251_v15  ;;  %v1435_v47 = vsel %vm1421_vm2, %v1396_v54, 0.0 }
 0x4bb   :  { %1313 = vadd.xlane.f32.xlu0 %v1312_v7  ;;  %v1430_v7 = vadd.f32 %v1429_v37, %v1428_v24  ;;  %v1451_v37 = vsel %vm1421_vm2, %v1404_v59, 0.0 }
 0x4bd   :  { %v1432_v25 = vadd.f32 %v1431_v57, %v1430_v7 }
 0x4be   :  { %v1272_v50 = vpop.xlane.xlu1 %1271 }
 0x4bf   :  { %v1341_v34 = vmul.f32 %v2542_v31, %v1272_v50  ;;  %v1378_v50 = vld [vmem:[%s2716_s6 + $0xa8] sm:$0xff] }
 0x4c1   :  { %v1405_v36 = vmul.f32 %v1373_v43, %v1341_v34  ;;  %v1384_v43 = vld [vmem:[%s2716_s6 + $0xd8] sm:$0xff] }
 0x4c3   :  { %v1187_v61 = vpop.f32.mrf.mxu3  ;;  %v1453_v57 = vsel %vm1421_vm2, %v1405_v36, 0.0 }
 0x4c4   :  { %v1188_v58 = vadd.f32 %v2460_v33, %v1187_v61  ;;  %v1248_v33 = vpop.xlane.xlu2 %1247  ;;  %v1366_v61 = vld [vmem:[%s2716_s6 + $0x48] sm:$0xff] }
 0x4c5   :  { %v1333_v42 = vmul.f32 %v2542_v31, %v1248_v33  ;;  %v1398_v26 = vmul.f32 %v1366_v61, %v1334_v23  ;;  %v1377_v61 = vld [vmem:[%s2716_s6 + $0xa0] sm:$0xff] }
 0x4c6   :  { %v1221_v27 = vmax.f32 %v1188_v58, 0.0  ;;  %v1433_v58 = vsel %vm1421_vm2, %v1395_v53, 0.0 }
 0x4c7   :  { %v1434_v51 = vadd.f32 %v1433_v58, %v1432_v25  ;;  %v1439_v15 = vsel %vm1421_vm2, %v1398_v26, 0.0 }
 0x4c8   :  { %v1315_v17 = vsel %vm537_vm0, %v1221_v27, 0.0  ;;  %v1397_v27 = vmul.f32 %v1365_v12, %v1333_v42  ;;  %v1376_v12 = vld [vmem:[%s2716_s6 + $0x98] sm:$0xff] }
 0x4c9   :  { %1316 = vadd.xlane.f32.xlu1 %v1315_v17  ;;  %v1335_v17 = vmul.f32 %v2542_v31, %v1254_v62  ;;  %v1436_v41 = vadd.f32 %v1435_v47, %v1434_v51 }
 0x4ca   :  { %v1437_v55 = vsel %vm1421_vm2, %v1397_v27, 0.0 }
 0x4cb   :  { %v1399_v6 = vmul.f32 %v1367_v1, %v1335_v17  ;;  %v1438_v49 = vadd.f32 %v1437_v55, %v1436_v41 }
 0x4cc   :  { %v1257_v13 = vpop.xlane.xlu2 %1256 }
 0x4cd   :  { %v1336_v40 = vmul.f32 %v2542_v31, %v1257_v13  ;;  %v1441_v63 = vsel %vm1421_vm2, %v1399_v6, 0.0  ;;  %v1440_v9 = vadd.f32 %v1439_v15, %v1438_v49 }
 0x4ce   :  { %v1278_v33 = vpop.xlane.xlu0 %1277 }
 0x4cf   :  { %v1400_v45 = vmul.f32 %v1368_v28, %v1336_v40  ;;  %v1442_v56 = vadd.f32 %v1441_v63, %v1440_v9  ;;  %v1343_v5 = vmul.f32 %v2542_v31, %v1278_v33  ;;  %v1379_v28 = vld [vmem:[%s2716_s6 + $0xb0] sm:$0xff] }
 0x4d1   :  { %v1443_v13 = vsel %vm1421_vm2, %v1400_v45, 0.0  ;;  %v1407_v54 = vmul.f32 %v1375_v14, %v1343_v5 }
 0x4d2   :  { %v1444_v22 = vadd.f32 %v1443_v13, %v1442_v56 }
 0x4d3   :  { %v1457_v47 = vsel %vm1421_vm2, %v1407_v54, 0.0 }
 0x4d4   :  { %v1266_v32 = vpop.xlane.xlu2 %1265  ;;  %v1446_v29 = vadd.f32 %v1445_v20, %v1444_v22 }
 0x4d5   :  { %v1339_v62 = vmul.f32 %v2542_v31, %v1266_v32 }
 0x4d6   :  { %v1281_v48 = vpop.xlane.xlu1 %1280  ;;  %v1448_v4 = vadd.f32 %v1447_v2, %v1446_v29 }
 0x4d7   :  { %v1403_v30 = vmul.f32 %v1371_v10, %v1339_v62  ;;  %v1344_v42 = vmul.f32 %v2542_v31, %v1281_v48  ;;  %v1382_v48 = vld [vmem:[%s2716_s6 + $0xc8] sm:$0xff] }
 0x4d9   :  { %v1449_v3 = vsel %vm1421_vm2, %v1403_v30, 0.0  ;;  %v1408_v17 = vmul.f32 %v1376_v12, %v1344_v42  ;;  %v1387_v12 = vld [vmem:[%s2716_s6 + $0xf0] sm:$0xff] }
 0x4da   :  { %v1450_v24 = vadd.f32 %v1449_v3, %v1448_v4 }
 0x4db   :  { %v1459_v55 = vsel %vm1421_vm2, %v1408_v17, 0.0  ;;  %v1388_v17 = vld [vmem:[%s2716_s6 + $0xf8] sm:$0xff] }
 0x4dc   :  { %v1275_v21 = vpop.xlane.xlu2 %1274  ;;  %v1452_v7 = vadd.f32 %v1451_v37, %v1450_v24 }
 0x4dd   :  { %v1342_v60 = vmul.f32 %v2542_v31, %v1275_v21 }
 0x4de   :  { %v1454_v1 = vadd.f32 %v1453_v57, %v1452_v7 }
 0x4df   :  { %v1406_v53 = vmul.f32 %v1374_v11, %v1342_v60  ;;  %v1385_v11 = vld [vmem:[%s2716_s6 + $0xe0] sm:$0xff] }
 0x4e1   :  { %v1455_v27 = vsel %vm1421_vm2, %v1406_v53, 0.0 }
 0x4e2   :  { %v1456_v51 = vadd.f32 %v1455_v27, %v1454_v1 }
 0x4e4   :  { %v1284_v8 = vpop.xlane.xlu2 %1283  ;;  %v1458_v41 = vadd.f32 %v1457_v47, %v1456_v51 }
 0x4e5   :  { %v1345_v23 = vmul.f32 %v2542_v31, %v1284_v8 }
 0x4e6   :  { %v1287_v46 = vpop.xlane.xlu0 %1286  ;;  %v1460_v49 = vadd.f32 %v1459_v55, %v1458_v41 }
 0x4e7   :  { %v1346_v25 = vmul.f32 %v2542_v31, %v1287_v46  ;;  %v1409_v26 = vmul.f32 %v1377_v61, %v1345_v23 }
 0x4e9   :  { %v1410_v6 = vmul.f32 %v1378_v50, %v1346_v25  ;;  %v1461_v15 = vsel %vm1421_vm2, %v1409_v26, 0.0 }
 0x4ea   :  { %v1462_v10 = vadd.f32 %v1461_v15, %v1460_v49 }
 0x4eb   :  { %v1463_v38 = vsel %vm1421_vm2, %v1410_v6, 0.0 }
 0x4ec   :  { %v1464_v56 = vadd.f32 %v1463_v38, %v1462_v10 }
 0x4ee   :  { %v1290_v32 = vpop.xlane.xlu1 %1289 }
 0x4ef   :  { %v1347_v40 = vmul.f32 %v2542_v31, %v1290_v32  ;;  %v1386_v32 = vld [vmem:[%s2716_s6 + $0xe8] sm:$0xff]  ;;  %s1865_s6 = smov [#allocation3]  }
 0x4f0   :  { %s1501_s28 = sshll.u32 %s1865_s6, 4  ;;  %s1502_s28 = int_to_ptr.vmem [resolvable:$true] %s1501_s28 }
 0x4f1   :  { %v1411_v45 = vmul.f32 %v1379_v28, %v1347_v40 }
 0x4f3   :  { %v1465_v13 = vsel %vm1421_vm2, %v1411_v45, 0.0 }
 0x4f4   :  { %v1466_v22 = vadd.f32 %v1465_v13, %v1464_v56 }
 0x4f6   :  { %v1293_v18 = vpop.xlane.xlu2 %1292 }
 0x4f7   :  { %v1348_v39 = vmul.f32 %v2542_v31, %v1293_v18 }
 0x4f9   :  { %v1412_v62 = vmul.f32 %v1380_v44, %v1348_v39  ;;  %v1492_v44 = vstv %s2717_s7 }
 0x4fb   :  { %v1467_v20 = vsel %vm1421_vm2, %v1412_v62, 0.0 }
 0x4fc   :  { %v1468_v29 = vadd.f32 %v1467_v20, %v1466_v22 }
 0x4fe   :  { %v1296_v58 = vpop.xlane.xlu0 %1295 }
 0x4ff   :  { %v1349_v35 = vmul.f32 %v2542_v31, %v1296_v58 }
 0x501   :  { %v1413_v16 = vmul.f32 %v1381_v52, %v1349_v35 }
 0x503   :  { %v1469_v2 = vsel %vm1421_vm2, %v1413_v16, 0.0 }
 0x504   :  { %v1470_v14 = vadd.f32 %v1469_v2, %v1468_v29 }
 0x506   :  { %v1299_v21 = vpop.xlane.xlu1 %1298 }
 0x507   :  { %v1350_v9 = vmul.f32 %v2542_v31, %v1299_v21 }
 0x509   :  { %v1414_v30 = vmul.f32 %v1382_v48, %v1350_v9 }
 0x50b   :  { %v1471_v36 = vsel %vm1421_vm2, %v1414_v30, 0.0 }
 0x50c   :  { %v1472_v24 = vadd.f32 %v1471_v36, %v1470_v14 }
 0x50e   :  { %v1302_v33 = vpop.xlane.xlu2 %1301 }
 0x50f   :  { %v1351_v19 = vmul.f32 %v2542_v31, %v1302_v33 }
 0x511   :  { %v1415_v59 = vmul.f32 %v1383_v0, %v1351_v19 }
 0x513   :  { %v1473_v37 = vsel %vm1421_vm2, %v1415_v59, 0.0 }
 0x514   :  { %v1474_v54 = vadd.f32 %v1473_v37, %v1472_v24 }
 0x516   :  { %v1305_v63 = vpop.xlane.xlu0 %1304 }
 0x517   :  { %v1352_v34 = vmul.f32 %v2542_v31, %v1305_v63 }
 0x519   :  { %v1416_v5 = vmul.f32 %v1384_v43, %v1352_v34 }
 0x51b   :  { %v1475_v18 = vsel %vm1421_vm2, %v1416_v5, 0.0 }
 0x51c   :  { %v1476_v61 = vadd.f32 %v1475_v18, %v1474_v54 }
 0x51e   :  { %v1308_v8 = vpop.xlane.xlu1 %1307 }
 0x51f   :  { %v1353_v60 = vmul.f32 %v2542_v31, %v1308_v8 }
 0x521   :  { %v1417_v53 = vmul.f32 %v1385_v11, %v1353_v60 }
 0x523   :  { %v1477_v23 = vsel %vm1421_vm2, %v1417_v53, 0.0 }
 0x524   :  { %v1478_v27 = vadd.f32 %v1477_v23, %v1476_v61 }
 0x526   :  { %v1311_v46 = vpop.xlane.xlu2 %1310 }
 0x527   :  { %v1354_v4 = vmul.f32 %v2542_v31, %v1311_v46 }
 0x529   :  { %v1418_v57 = vmul.f32 %v1386_v32, %v1354_v4 }
 0x52b   :  { %v1479_v58 = vsel %vm1421_vm2, %v1418_v57, 0.0 }
 0x52c   :  { %v1480_v47 = vadd.f32 %v1479_v58, %v1478_v27 }
 0x52e   :  { %v1314_v3 = vpop.xlane.xlu0 %1313 }
 0x52f   :  { %v1355_v42 = vmul.f32 %v2542_v31, %v1314_v3 }
 0x531   :  { %v1419_v7 = vmul.f32 %v1387_v12, %v1355_v42 }
 0x533   :  { %v1481_v1 = vsel %vm1421_vm2, %v1419_v7, 0.0 }
 0x534   :  { %v1482_v40 = vadd.f32 %v1481_v1, %v1480_v47 }
 0x53c   :  { %v1317_v25 = vpop.xlane.xlu1 %1316 }
 0x53d   :  { %v1356_v50 = vmul.f32 %v2542_v31, %v1317_v25 }
 0x53f   :  { %v1420_v26 = vmul.f32 %v1388_v17, %v1356_v50 }
 0x541   :  { %v1483_v51 = vsel %vm1421_vm2, %v1420_v26, 0.0 }
 0x542   :  { %v1484_v28 = vadd.f32 %v1483_v51, %v1482_v40 }
 0x544   :  { %v1485_v21 = vrot.slane %v1484_v28, 4 }
 0x546   :  { %v1486_v55 = vadd.f32 %v1485_v21, %v1484_v28 }
 0x548   :  { %v1487_v6 = vrot.slane %v1486_v55, 2 }
 0x54a   :  { %v1488_v39 = vadd.f32 %v1487_v6, %v1486_v55 }
 0x54c   :  { %v1489_v41 = vrot.slane %v1488_v39, 1 }
 0x54e   :  { %v1490_v31 = vadd.f32 %v1489_v41, %v1488_v39 }
 0x550   :  { %v1493_v33 = vadd.f32 %v1492_v44, %v1490_v31 }
 0x552   :  { %1495 = vst.msk [vmem:[#allocation3] sm:$0x1] %vm1494_vm3, %v1493_v33 }
 0x553   :  { %1506 = dma.vmem_to_hbm [thread:$0]  %s1502_s28, 16, %s1504_s9, [#allocation4]  }
 0x554   :  { %1862 = dma.done.wait [#allocation4], 16  }
 0x555   :  { %1863 = vsyncadd [#allocation4], 4294967280 }
 0x556   :  { %1511 = vsyncpa [#allocation4], 1 }

</bundles_post_ra>
